<compile_context>
chip_gen: v7x
topology: tpu7x:2x2x1
jax: 0.10.0
libtpu: 0.0.40
codegen_flags: <defaults>
</compile_context>

<pallas_src>
import functools

import jax
import jax.numpy as jnp
from jax.experimental import pallas as pl
from jax.experimental.pallas import tpu as pltpu

_OUT_LANES = 128  # lane-dense output slab width (>= 4 sums, multiple of 128)


def _pool1d_max_same(x, k, axis, masks):
    """1-D max pool (stride 1, 'same' padding, odd k) along `axis` of (C, H, W).

    Shifted neighbours are produced with pltpu.roll; wrapped border positions
    are masked to 0 using the precomputed masks.  Valid ONLY for non-negative
    inputs, where 0-fill == -inf-fill for max pooling.
    """
    r = (k - 1) // 2
    n = x.shape[axis]
    zero = jnp.zeros((), x.dtype)
    out = x  # centre tap
    for d in range(-r, r + 1):
        if d == 0:
            continue
        # shifted[i] = x[i + d] (circular); wrapped positions masked to 0.
        shifted = pltpu.roll(x, shift=(-d) % n, axis=axis)
        out = jnp.maximum(out, jnp.where(masks[(axis, d)], shifted, zero))
    return out


def _maxpool2d_same(x, k, masks):
    """k x k max pool, stride 1, 'same' padding, for non-negative (C, H, W) x."""
    return _pool1d_max_same(_pool1d_max_same(x, k, 2, masks), k, 1, masks)


def _sum_hw(v):
    """(C, H, W) -> (C, 1) f32 sum over H, W.

    Lane (W) reduction is pushed to the MXU (ones-vector matmul, f32 acc) so
    the XLU keeps its slack for the roll taps; the tiny H reduce stays a
    sublane reduce.  Falls back to plain jnp.sum if the reshape would cross a
    packed-tile boundary.
    """
    c, h, w = v.shape
    pack = 16 if v.dtype == jnp.bfloat16 else 8
    if h % pack == 0:
        ones_w = jnp.ones((w, 1), v.dtype)
        col = jnp.dot(v.reshape(c * h, w), ones_w,
                      preferred_element_type=jnp.float32)       # (C*H, 1) on MXU
        return jnp.sum(col.reshape(c, h, 1), axis=1)            # (C, 1)
    return jnp.sum(jnp.sum(v.astype(jnp.float32), axis=2), axis=1, keepdims=True)


def _boundary_kernel(pred_ref, lab_ref, sums_ref, *, theta0, theta, gt_dtype):
    x = pred_ref[0].astype(jnp.float32)   # (C, H, W) f32 logits for this element
    lbl = lab_ref[0]                       # (H, W) int32 labels
    c, h, w = x.shape

    # Hoisted border-validity masks: 2*(r_max) distinct masks per axis, built
    # once and reused by every pool tap (instead of per-tap cmp+broadcast).
    r_max = max((theta0 - 1) // 2, (theta - 1) // 2)
    h_idx = jax.lax.broadcasted_iota(jnp.int32, (1, h, 1), 1)
    w_idx = jax.lax.broadcasted_iota(jnp.int32, (1, 1, w), 2)
    masks = {}
    for axis, idx, n_ax in ((1, h_idx, h), (2, w_idx, w)):
        for d in range(-r_max, r_max + 1):
            if d == 0:
                continue
            masks[(axis, d)] = (idx < (n_ax - d)) if d > 0 else (idx >= (-d))

    # Softmax over the channel axis: one reciprocal per pixel + C multiplies.
    # approx=False kept for tight validation; approx=True is a free EUP win.
    m = jnp.max(x, axis=0, keepdims=True)
    e = jnp.exp(x - m)
    inv_den = pl.reciprocal(jnp.sum(e, axis=0, keepdims=True), approx=False)
    p = e * inv_den

    # 1 - one_hot(gt) built against a (C,1,1) iota (no C*H*W int temporary).
    # Values are exactly {0,1}, so bf16 pooling (v6e/v7x) is bit-exact.
    cls = jax.lax.broadcasted_iota(jnp.int32, (c, 1, 1), 0)
    gt_inv = (lbl[None, :, :] != cls).astype(gt_dtype)

    # Boundary maps (theta0 pool); reduce their sums immediately so only
    # pr_b / gt_b stay live for the extended-pool stage.
    pr_inv = 1.0 - p
    pr_b = _maxpool2d_same(pr_inv, theta0, masks) - pr_inv
    den_P = _sum_hw(pr_b)

    gt_b = _maxpool2d_same(gt_inv, theta0, masks) - gt_inv      # {0,1}
    den_R = _sum_hw(gt_b)

    # Extended boundary maps (theta pool), built and consumed one at a time.
    gt_ext = _maxpool2d_same(gt_b, theta, masks).astype(jnp.float32)
    num_P = _sum_hw(pr_b * gt_ext)
    pr_ext = _maxpool2d_same(pr_b, theta, masks)
    num_R = _sum_hw(pr_ext * gt_b.astype(jnp.float32))

    # Lane-dense output: the four sums in lanes 0..3, zero padding elsewhere.
    pad = jnp.zeros((c, _OUT_LANES - 4), jnp.float32)
    sums_ref[0] = jnp.concatenate([num_P, den_P, num_R, den_R, pad], axis=1)


def _device_kind():
    try:
        return jax.devices()[0].device_kind.lower()
    except Exception:
        return ""


def boundary_loss(pred, soft_y, cls_num, theta0=3, theta=5):
    """Pallas implementation of BoundaryLoss.forward (theta0/theta must be odd)."""
    n, c, h, w = pred.shape
    assert c == cls_num
    assert theta0 % 2 == 1 and theta % 2 == 1

    if soft_y.ndim == 4:           # (N, 1, H, W) label map -> (N, H, W)
        soft_y = soft_y[:, 0]

    kind = _device_kind()
    is_v7 = ("v7" in kind) or ("7x" in kind)
    is_v6 = "v6" in kind
    # bf16 VPU exists on v6e/v7x; gt-side maps are {0,1} so bf16 is bit-exact.
    gt_dtype = jnp.bfloat16 if (is_v6 or is_v7) else jnp.float32
    # Generation-dependent scoped-VMEM limit.
    if is_v7:
        vmem_limit = 48 * 1024 * 1024          # 64 MiB physical on v7x
    elif is_v6 or ("v5" in kind):
        vmem_limit = 96 * 1024 * 1024          # 128 MiB physical on v5e/v6e
    else:
        vmem_limit = 48 * 1024 * 1024

    # Keep bf16 inputs in bf16 (halves DMA + double-buffered tile); upcast to
    # f32 for the softmax inside the kernel.
    if pred.dtype not in (jnp.bfloat16, jnp.float32):
        pred = pred.astype(jnp.float32)

    sums = pl.pallas_call(
        functools.partial(_boundary_kernel, theta0=theta0, theta=theta,
                          gt_dtype=gt_dtype),
        out_shape=jax.ShapeDtypeStruct((n, c, _OUT_LANES), jnp.float32),
        grid=(n,),
        in_specs=[
            pl.BlockSpec((1, c, h, w), lambda i: (i, 0, 0, 0)),
            pl.BlockSpec((1, h, w), lambda i: (i, 0, 0)),
        ],
        out_specs=pl.BlockSpec((1, c, _OUT_LANES), lambda i: (i, 0, 0)),
        compiler_params=pltpu.CompilerParams(
            dimension_semantics=("parallel",),
            vmem_limit_bytes=vmem_limit,
        ),
    )(pred, soft_y.astype(jnp.int32))

    # Tiny scalar epilogue in JAX (kept out of the kernel for lane-dense stores).
    num_P, den_P = sums[:, :, 0], sums[:, :, 1]
    num_R, den_R = sums[:, :, 2], sums[:, :, 3]
    eps = jnp.float32(1e-7)
    P = num_P / (den_P + eps)
    R = num_R / (den_R + eps)
    BF1 = 2.0 * P * R / (P + R + eps)
    return jnp.mean(1.0 - BF1)


def boundary_loss_ref(pred, soft_y, cls_num, theta0=3, theta=5):
    """Pure-JAX reference (mirrors the PyTorch forward) for validation."""
    p = jax.nn.softmax(pred.astype(jnp.float32), axis=1)
    one_hot = jax.nn.one_hot(soft_y, cls_num, axis=1, dtype=jnp.float32)

    def mp(x, k):
        r = (k - 1) // 2
        return jax.lax.reduce_window(
            x, -jnp.inf, jax.lax.max, (1, 1, k, k), (1, 1, 1, 1),
            ((0, 0), (0, 0), (r, r), (r, r)))

    gt_b = mp(1.0 - one_hot, theta0) - (1.0 - one_hot)
    pr_b = mp(1.0 - p, theta0) - (1.0 - p)
    gt_e = mp(gt_b, theta)
    pr_e = mp(pr_b, theta)
    s = lambda v: jnp.sum(v, axis=(2, 3))
    P = s(pr_b * gt_e) / (s(pr_b) + 1e-7)
    R = s(pr_e * gt_b) / (s(gt_b) + 1e-7)
    BF1 = 2.0 * P * R / (P + R + 1e-7)
    return jnp.mean(1.0 - BF1)


if __name__ == "__main__":
    N, C, H, W = 2, 4, 16, 16
    key = jax.random.PRNGKey(0)
    kp, kl = jax.random.split(key)
    pred = jax.random.normal(kp, (N, C, H, W), dtype=jnp.float32)
    soft_y = jax.random.randint(kl, (N, H, W), 0, C, dtype=jnp.int32)

    loss = boundary_loss(pred, soft_y, cls_num=C, theta0=3, theta=5)
    loss = jax.block_until_ready(loss)

    ref = boundary_loss_ref(pred, soft_y, cls_num=C, theta0=3, theta=5)
    assert jnp.allclose(loss, ref, atol=1e-5, rtol=1e-5), (loss, ref)
    print("KERNEL_OK")
</pallas_src>

<mosaic_0001>
module attributes {stable_mosaic.version = 11 : i64} {
  func.func @_boundary_kernel(%arg0: i32, %arg1: memref<1x4x16x16xf32, #tpu.memory_space<vmem>>, %arg2: memref<1x16x16xi32, #tpu.memory_space<vmem>>, %arg3: memref<1x4x128xf32, #tpu.memory_space<vmem>>) attributes {dimension_semantics = [#tpu.dimension_semantics<parallel>], iteration_bounds = array<i64: 2>, scalar_prefetch = 0 : i64, scratch_operands = 0 : i64, tpu.core_type = #tpu.core_type<tc>, window_params = [{transform_indices = @transform_0, window_bounds = array<i64: 1, 4, 16, 16>}, {transform_indices = @transform_1, window_bounds = array<i64: 1, 16, 16>}, {transform_indices = @transform_2, window_bounds = array<i64: 1, 4, 128>}]} {
    %c0 = arith.constant 0 : index
    %c0_0 = arith.constant 0 : index
    %c0_1 = arith.constant 0 : index
    %c0_2 = arith.constant 0 : index
    %0 = vector.load %arg1[%c0, %c0_0, %c0_1, %c0_2] : memref<1x4x16x16xf32, #tpu.memory_space<vmem>>, vector<1x4x16x16xf32>
    %1 = vector.shape_cast %0 : vector<1x4x16x16xf32> to vector<4x16x16xf32>
    %c0_3 = arith.constant 0 : index
    %c0_4 = arith.constant 0 : index
    %c0_5 = arith.constant 0 : index
    %2 = vector.load %arg2[%c0_3, %c0_4, %c0_5] : memref<1x16x16xi32, #tpu.memory_space<vmem>>, vector<1x16x16xi32>
    %3 = vector.shape_cast %2 : vector<1x16x16xi32> to vector<16x16xi32>
    %4 = tpu.iota {dimensions = array<i32: 1>} : vector<1x16x1xi32>
    %5 = tpu.iota {dimensions = array<i32: 2>} : vector<1x1x16xi32>
    %c2_i32 = arith.constant 2 : i32
    %6 = vector.broadcast %c2_i32 : i32 to vector<1x16x1xi32>
    %7 = arith.cmpi sge, %4, %6 : vector<1x16x1xi32>
    %c1_i32 = arith.constant 1 : i32
    %8 = vector.broadcast %c1_i32 : i32 to vector<1x16x1xi32>
    %9 = arith.cmpi sge, %4, %8 : vector<1x16x1xi32>
    %c15_i32 = arith.constant 15 : i32
    %10 = vector.broadcast %c15_i32 : i32 to vector<1x16x1xi32>
    %11 = arith.cmpi slt, %4, %10 : vector<1x16x1xi32>
    %c14_i32 = arith.constant 14 : i32
    %12 = vector.broadcast %c14_i32 : i32 to vector<1x16x1xi32>
    %13 = arith.cmpi slt, %4, %12 : vector<1x16x1xi32>
    %c2_i32_6 = arith.constant 2 : i32
    %14 = vector.broadcast %c2_i32_6 : i32 to vector<1x1x16xi32>
    %15 = arith.cmpi sge, %5, %14 : vector<1x1x16xi32>
    %c1_i32_7 = arith.constant 1 : i32
    %16 = vector.broadcast %c1_i32_7 : i32 to vector<1x1x16xi32>
    %17 = arith.cmpi sge, %5, %16 : vector<1x1x16xi32>
    %c15_i32_8 = arith.constant 15 : i32
    %18 = vector.broadcast %c15_i32_8 : i32 to vector<1x1x16xi32>
    %19 = arith.cmpi slt, %5, %18 : vector<1x1x16xi32>
    %c14_i32_9 = arith.constant 14 : i32
    %20 = vector.broadcast %c14_i32_9 : i32 to vector<1x1x16xi32>
    %21 = arith.cmpi slt, %5, %20 : vector<1x1x16xi32>
    %cst = arith.constant dense<0xFF800000> : vector<16x16xf32>
    %22 = vector.multi_reduction <maximumf>, %1, %cst [0] : vector<4x16x16xf32> to vector<16x16xf32>
    %23 = vector.shape_cast %22 : vector<16x16xf32> to vector<1x16x16xf32>
    %24 = vector.broadcast %23 : vector<1x16x16xf32> to vector<4x16x16xf32>
    %25 = arith.subf %1, %24 : vector<4x16x16xf32>
    %26 = math.exp %25 : vector<4x16x16xf32>
    %cst_10 = arith.constant dense<0.000000e+00> : vector<16x16xf32>
    %27 = vector.multi_reduction <add>, %26, %cst_10 [0] : vector<4x16x16xf32> to vector<16x16xf32>
    %28 = vector.shape_cast %27 : vector<16x16xf32> to vector<1x16x16xf32>
    %29 = tpu.reciprocal %28 : vector<1x16x16xf32> -> vector<1x16x16xf32>
    %30 = vector.broadcast %29 : vector<1x16x16xf32> to vector<4x16x16xf32>
    %31 = arith.mulf %26, %30 : vector<4x16x16xf32>
    %32 = tpu.iota {dimensions = array<i32: 0>} : vector<4x1x1xi32>
    %33 = vector.shape_cast %3 : vector<16x16xi32> to vector<1x16x16xi32>
    %34 = vector.broadcast %33 : vector<1x16x16xi32> to vector<4x16x16xi32>
    %35 = vector.broadcast %32 : vector<4x1x1xi32> to vector<4x16x16xi32>
    %36 = arith.cmpi ne, %34, %35 : vector<4x16x16xi32>
    %37 = arith.extui %36 : vector<4x16x16xi1> to vector<4x16x16xi32>
    %38 = arith.sitofp %37 : vector<4x16x16xi32> to vector<4x16x16xf32>
    %cst_11 = arith.constant 1.000000e+00 : f32
    %39 = vector.broadcast %cst_11 : f32 to vector<4x16x16xf32>
    %40 = arith.subf %39, %31 : vector<4x16x16xf32>
    %c1_i32_12 = arith.constant 1 : i32
    %41 = tpu.dynamic_rotate %40 by %c1_i32_12 dim 2 : vector<4x16x16xf32>, i32 -> vector<4x16x16xf32>
    %cst_13 = arith.constant 0.000000e+00 : f32
    %42 = vector.shape_cast %17 : vector<1x1x16xi1> to vector<1x1x16xi1>
    %43 = vector.broadcast %42 : vector<1x1x16xi1> to vector<4x16x16xi1>
    %44 = vector.broadcast %cst_13 : f32 to vector<4x16x16xf32>
    %45 = arith.select %43, %41, %44 : vector<4x16x16xi1>, vector<4x16x16xf32>
    %46 = arith.maximumf %40, %45 : vector<4x16x16xf32>
    %c15_i32_14 = arith.constant 15 : i32
    %47 = tpu.dynamic_rotate %40 by %c15_i32_14 dim 2 : vector<4x16x16xf32>, i32 -> vector<4x16x16xf32>
    %cst_15 = arith.constant 0.000000e+00 : f32
    %48 = vector.shape_cast %19 : vector<1x1x16xi1> to vector<1x1x16xi1>
    %49 = vector.broadcast %48 : vector<1x1x16xi1> to vector<4x16x16xi1>
    %50 = vector.broadcast %cst_15 : f32 to vector<4x16x16xf32>
    %51 = arith.select %49, %47, %50 : vector<4x16x16xi1>, vector<4x16x16xf32>
    %52 = arith.maximumf %46, %51 : vector<4x16x16xf32>
    %c1_i32_16 = arith.constant 1 : i32
    %53 = tpu.dynamic_rotate %52 by %c1_i32_16 dim 1 : vector<4x16x16xf32>, i32 -> vector<4x16x16xf32>
    %cst_17 = arith.constant 0.000000e+00 : f32
    %54 = vector.shape_cast %9 : vector<1x16x1xi1> to vector<1x16x1xi1>
    %55 = vector.broadcast %54 : vector<1x16x1xi1> to vector<4x16x16xi1>
    %56 = vector.broadcast %cst_17 : f32 to vector<4x16x16xf32>
    %57 = arith.select %55, %53, %56 : vector<4x16x16xi1>, vector<4x16x16xf32>
    %58 = arith.maximumf %52, %57 : vector<4x16x16xf32>
    %c15_i32_18 = arith.constant 15 : i32
    %59 = tpu.dynamic_rotate %52 by %c15_i32_18 dim 1 : vector<4x16x16xf32>, i32 -> vector<4x16x16xf32>
    %cst_19 = arith.constant 0.000000e+00 : f32
    %60 = vector.shape_cast %11 : vector<1x16x1xi1> to vector<1x16x1xi1>
    %61 = vector.broadcast %60 : vector<1x16x1xi1> to vector<4x16x16xi1>
    %62 = vector.broadcast %cst_19 : f32 to vector<4x16x16xf32>
    %63 = arith.select %61, %59, %62 : vector<4x16x16xi1>, vector<4x16x16xf32>
    %64 = arith.maximumf %58, %63 : vector<4x16x16xf32>
    %65 = arith.subf %64, %40 : vector<4x16x16xf32>
    %cst_20 = arith.constant 1.000000e+00 : f32
    %66 = vector.broadcast %cst_20 : f32 to vector<16x1xf32>
    %67 = vector.shape_cast %65 : vector<4x16x16xf32> to vector<64x16xf32>
    %cst_21 = arith.constant dense<0.000000e+00> : vector<64x1xf32>
    %68 = tpu.matmul %67, %66, %cst_21 {dimension_numbers = #tpu.dot_dimension_numbers<[1], [0], [0], [1], [0, 0, 1, 1], [], []>} : vector<64x16xf32>, vector<16x1xf32>, vector<64x1xf32> -> vector<64x1xf32>
    %69 = vector.shape_cast %68 : vector<64x1xf32> to vector<4x16x1xf32>
    %cst_22 = arith.constant dense<0.000000e+00> : vector<4x1xf32>
    %70 = vector.multi_reduction <add>, %69, %cst_22 [1] : vector<4x16x1xf32> to vector<4x1xf32>
    %c1_i32_23 = arith.constant 1 : i32
    %71 = tpu.dynamic_rotate %38 by %c1_i32_23 dim 2 : vector<4x16x16xf32>, i32 -> vector<4x16x16xf32>
    %cst_24 = arith.constant 0.000000e+00 : f32
    %72 = vector.shape_cast %17 : vector<1x1x16xi1> to vector<1x1x16xi1>
    %73 = vector.broadcast %72 : vector<1x1x16xi1> to vector<4x16x16xi1>
    %74 = vector.broadcast %cst_24 : f32 to vector<4x16x16xf32>
    %75 = arith.select %73, %71, %74 : vector<4x16x16xi1>, vector<4x16x16xf32>
    %76 = arith.maximumf %38, %75 : vector<4x16x16xf32>
    %c15_i32_25 = arith.constant 15 : i32
    %77 = tpu.dynamic_rotate %38 by %c15_i32_25 dim 2 : vector<4x16x16xf32>, i32 -> vector<4x16x16xf32>
    %cst_26 = arith.constant 0.000000e+00 : f32
    %78 = vector.shape_cast %19 : vector<1x1x16xi1> to vector<1x1x16xi1>
    %79 = vector.broadcast %78 : vector<1x1x16xi1> to vector<4x16x16xi1>
    %80 = vector.broadcast %cst_26 : f32 to vector<4x16x16xf32>
    %81 = arith.select %79, %77, %80 : vector<4x16x16xi1>, vector<4x16x16xf32>
    %82 = arith.maximumf %76, %81 : vector<4x16x16xf32>
    %c1_i32_27 = arith.constant 1 : i32
    %83 = tpu.dynamic_rotate %82 by %c1_i32_27 dim 1 : vector<4x16x16xf32>, i32 -> vector<4x16x16xf32>
    %cst_28 = arith.constant 0.000000e+00 : f32
    %84 = vector.shape_cast %9 : vector<1x16x1xi1> to vector<1x16x1xi1>
    %85 = vector.broadcast %84 : vector<1x16x1xi1> to vector<4x16x16xi1>
    %86 = vector.broadcast %cst_28 : f32 to vector<4x16x16xf32>
    %87 = arith.select %85, %83, %86 : vector<4x16x16xi1>, vector<4x16x16xf32>
    %88 = arith.maximumf %82, %87 : vector<4x16x16xf32>
    %c15_i32_29 = arith.constant 15 : i32
    %89 = tpu.dynamic_rotate %82 by %c15_i32_29 dim 1 : vector<4x16x16xf32>, i32 -> vector<4x16x16xf32>
    %cst_30 = arith.constant 0.000000e+00 : f32
    %90 = vector.shape_cast %11 : vector<1x16x1xi1> to vector<1x16x1xi1>
    %91 = vector.broadcast %90 : vector<1x16x1xi1> to vector<4x16x16xi1>
    %92 = vector.broadcast %cst_30 : f32 to vector<4x16x16xf32>
    %93 = arith.select %91, %89, %92 : vector<4x16x16xi1>, vector<4x16x16xf32>
    %94 = arith.maximumf %88, %93 : vector<4x16x16xf32>
    %95 = arith.subf %94, %38 : vector<4x16x16xf32>
    %cst_31 = arith.constant 1.000000e+00 : f32
    %96 = vector.broadcast %cst_31 : f32 to vector<16x1xf32>
    %97 = vector.shape_cast %95 : vector<4x16x16xf32> to vector<64x16xf32>
    %cst_32 = arith.constant dense<0.000000e+00> : vector<64x1xf32>
    %98 = tpu.matmul %97, %96, %cst_32 {dimension_numbers = #tpu.dot_dimension_numbers<[1], [0], [0], [1], [0, 0, 1, 1], [], []>} : vector<64x16xf32>, vector<16x1xf32>, vector<64x1xf32> -> vector<64x1xf32>
    %99 = vector.shape_cast %98 : vector<64x1xf32> to vector<4x16x1xf32>
    %cst_33 = arith.constant dense<0.000000e+00> : vector<4x1xf32>
    %100 = vector.multi_reduction <add>, %99, %cst_33 [1] : vector<4x16x1xf32> to vector<4x1xf32>
    %c2_i32_34 = arith.constant 2 : i32
    %101 = tpu.dynamic_rotate %95 by %c2_i32_34 dim 2 : vector<4x16x16xf32>, i32 -> vector<4x16x16xf32>
    %cst_35 = arith.constant 0.000000e+00 : f32
    %102 = vector.shape_cast %15 : vector<1x1x16xi1> to vector<1x1x16xi1>
    %103 = vector.broadcast %102 : vector<1x1x16xi1> to vector<4x16x16xi1>
    %104 = vector.broadcast %cst_35 : f32 to vector<4x16x16xf32>
    %105 = arith.select %103, %101, %104 : vector<4x16x16xi1>, vector<4x16x16xf32>
    %106 = arith.maximumf %95, %105 : vector<4x16x16xf32>
    %c1_i32_36 = arith.constant 1 : i32
    %107 = tpu.dynamic_rotate %95 by %c1_i32_36 dim 2 : vector<4x16x16xf32>, i32 -> vector<4x16x16xf32>
    %cst_37 = arith.constant 0.000000e+00 : f32
    %108 = vector.shape_cast %17 : vector<1x1x16xi1> to vector<1x1x16xi1>
    %109 = vector.broadcast %108 : vector<1x1x16xi1> to vector<4x16x16xi1>
    %110 = vector.broadcast %cst_37 : f32 to vector<4x16x16xf32>
    %111 = arith.select %109, %107, %110 : vector<4x16x16xi1>, vector<4x16x16xf32>
    %112 = arith.maximumf %106, %111 : vector<4x16x16xf32>
    %c15_i32_38 = arith.constant 15 : i32
    %113 = tpu.dynamic_rotate %95 by %c15_i32_38 dim 2 : vector<4x16x16xf32>, i32 -> vector<4x16x16xf32>
    %cst_39 = arith.constant 0.000000e+00 : f32
    %114 = vector.shape_cast %19 : vector<1x1x16xi1> to vector<1x1x16xi1>
    %115 = vector.broadcast %114 : vector<1x1x16xi1> to vector<4x16x16xi1>
    %116 = vector.broadcast %cst_39 : f32 to vector<4x16x16xf32>
    %117 = arith.select %115, %113, %116 : vector<4x16x16xi1>, vector<4x16x16xf32>
    %118 = arith.maximumf %112, %117 : vector<4x16x16xf32>
    %c14_i32_40 = arith.constant 14 : i32
    %119 = tpu.dynamic_rotate %95 by %c14_i32_40 dim 2 : vector<4x16x16xf32>, i32 -> vector<4x16x16xf32>
    %cst_41 = arith.constant 0.000000e+00 : f32
    %120 = vector.shape_cast %21 : vector<1x1x16xi1> to vector<1x1x16xi1>
    %121 = vector.broadcast %120 : vector<1x1x16xi1> to vector<4x16x16xi1>
    %122 = vector.broadcast %cst_41 : f32 to vector<4x16x16xf32>
    %123 = arith.select %121, %119, %122 : vector<4x16x16xi1>, vector<4x16x16xf32>
    %124 = arith.maximumf %118, %123 : vector<4x16x16xf32>
    %c2_i32_42 = arith.constant 2 : i32
    %125 = tpu.dynamic_rotate %124 by %c2_i32_42 dim 1 : vector<4x16x16xf32>, i32 -> vector<4x16x16xf32>
    %cst_43 = arith.constant 0.000000e+00 : f32
    %126 = vector.shape_cast %7 : vector<1x16x1xi1> to vector<1x16x1xi1>
    %127 = vector.broadcast %126 : vector<1x16x1xi1> to vector<4x16x16xi1>
    %128 = vector.broadcast %cst_43 : f32 to vector<4x16x16xf32>
    %129 = arith.select %127, %125, %128 : vector<4x16x16xi1>, vector<4x16x16xf32>
    %130 = arith.maximumf %124, %129 : vector<4x16x16xf32>
    %c1_i32_44 = arith.constant 1 : i32
    %131 = tpu.dynamic_rotate %124 by %c1_i32_44 dim 1 : vector<4x16x16xf32>, i32 -> vector<4x16x16xf32>
    %cst_45 = arith.constant 0.000000e+00 : f32
    %132 = vector.shape_cast %9 : vector<1x16x1xi1> to vector<1x16x1xi1>
    %133 = vector.broadcast %132 : vector<1x16x1xi1> to vector<4x16x16xi1>
    %134 = vector.broadcast %cst_45 : f32 to vector<4x16x16xf32>
    %135 = arith.select %133, %131, %134 : vector<4x16x16xi1>, vector<4x16x16xf32>
    %136 = arith.maximumf %130, %135 : vector<4x16x16xf32>
    %c15_i32_46 = arith.constant 15 : i32
    %137 = tpu.dynamic_rotate %124 by %c15_i32_46 dim 1 : vector<4x16x16xf32>, i32 -> vector<4x16x16xf32>
    %cst_47 = arith.constant 0.000000e+00 : f32
    %138 = vector.shape_cast %11 : vector<1x16x1xi1> to vector<1x16x1xi1>
    %139 = vector.broadcast %138 : vector<1x16x1xi1> to vector<4x16x16xi1>
    %140 = vector.broadcast %cst_47 : f32 to vector<4x16x16xf32>
    %141 = arith.select %139, %137, %140 : vector<4x16x16xi1>, vector<4x16x16xf32>
    %142 = arith.maximumf %136, %141 : vector<4x16x16xf32>
    %c14_i32_48 = arith.constant 14 : i32
    %143 = tpu.dynamic_rotate %124 by %c14_i32_48 dim 1 : vector<4x16x16xf32>, i32 -> vector<4x16x16xf32>
    %cst_49 = arith.constant 0.000000e+00 : f32
    %144 = vector.shape_cast %13 : vector<1x16x1xi1> to vector<1x16x1xi1>
    %145 = vector.broadcast %144 : vector<1x16x1xi1> to vector<4x16x16xi1>
    %146 = vector.broadcast %cst_49 : f32 to vector<4x16x16xf32>
    %147 = arith.select %145, %143, %146 : vector<4x16x16xi1>, vector<4x16x16xf32>
    %148 = arith.maximumf %142, %147 : vector<4x16x16xf32>
    %149 = arith.mulf %65, %148 : vector<4x16x16xf32>
    %cst_50 = arith.constant 1.000000e+00 : f32
    %150 = vector.broadcast %cst_50 : f32 to vector<16x1xf32>
    %151 = vector.shape_cast %149 : vector<4x16x16xf32> to vector<64x16xf32>
    %cst_51 = arith.constant dense<0.000000e+00> : vector<64x1xf32>
    %152 = tpu.matmul %151, %150, %cst_51 {dimension_numbers = #tpu.dot_dimension_numbers<[1], [0], [0], [1], [0, 0, 1, 1], [], []>} : vector<64x16xf32>, vector<16x1xf32>, vector<64x1xf32> -> vector<64x1xf32>
    %153 = vector.shape_cast %152 : vector<64x1xf32> to vector<4x16x1xf32>
    %cst_52 = arith.constant dense<0.000000e+00> : vector<4x1xf32>
    %154 = vector.multi_reduction <add>, %153, %cst_52 [1] : vector<4x16x1xf32> to vector<4x1xf32>
    %c2_i32_53 = arith.constant 2 : i32
    %155 = tpu.dynamic_rotate %65 by %c2_i32_53 dim 2 : vector<4x16x16xf32>, i32 -> vector<4x16x16xf32>
    %cst_54 = arith.constant 0.000000e+00 : f32
    %156 = vector.shape_cast %15 : vector<1x1x16xi1> to vector<1x1x16xi1>
    %157 = vector.broadcast %156 : vector<1x1x16xi1> to vector<4x16x16xi1>
    %158 = vector.broadcast %cst_54 : f32 to vector<4x16x16xf32>
    %159 = arith.select %157, %155, %158 : vector<4x16x16xi1>, vector<4x16x16xf32>
    %160 = arith.maximumf %65, %159 : vector<4x16x16xf32>
    %c1_i32_55 = arith.constant 1 : i32
    %161 = tpu.dynamic_rotate %65 by %c1_i32_55 dim 2 : vector<4x16x16xf32>, i32 -> vector<4x16x16xf32>
    %cst_56 = arith.constant 0.000000e+00 : f32
    %162 = vector.shape_cast %17 : vector<1x1x16xi1> to vector<1x1x16xi1>
    %163 = vector.broadcast %162 : vector<1x1x16xi1> to vector<4x16x16xi1>
    %164 = vector.broadcast %cst_56 : f32 to vector<4x16x16xf32>
    %165 = arith.select %163, %161, %164 : vector<4x16x16xi1>, vector<4x16x16xf32>
    %166 = arith.maximumf %160, %165 : vector<4x16x16xf32>
    %c15_i32_57 = arith.constant 15 : i32
    %167 = tpu.dynamic_rotate %65 by %c15_i32_57 dim 2 : vector<4x16x16xf32>, i32 -> vector<4x16x16xf32>
    %cst_58 = arith.constant 0.000000e+00 : f32
    %168 = vector.shape_cast %19 : vector<1x1x16xi1> to vector<1x1x16xi1>
    %169 = vector.broadcast %168 : vector<1x1x16xi1> to vector<4x16x16xi1>
    %170 = vector.broadcast %cst_58 : f32 to vector<4x16x16xf32>
    %171 = arith.select %169, %167, %170 : vector<4x16x16xi1>, vector<4x16x16xf32>
    %172 = arith.maximumf %166, %171 : vector<4x16x16xf32>
    %c14_i32_59 = arith.constant 14 : i32
    %173 = tpu.dynamic_rotate %65 by %c14_i32_59 dim 2 : vector<4x16x16xf32>, i32 -> vector<4x16x16xf32>
    %cst_60 = arith.constant 0.000000e+00 : f32
    %174 = vector.shape_cast %21 : vector<1x1x16xi1> to vector<1x1x16xi1>
    %175 = vector.broadcast %174 : vector<1x1x16xi1> to vector<4x16x16xi1>
    %176 = vector.broadcast %cst_60 : f32 to vector<4x16x16xf32>
    %177 = arith.select %175, %173, %176 : vector<4x16x16xi1>, vector<4x16x16xf32>
    %178 = arith.maximumf %172, %177 : vector<4x16x16xf32>
    %c2_i32_61 = arith.constant 2 : i32
    %179 = tpu.dynamic_rotate %178 by %c2_i32_61 dim 1 : vector<4x16x16xf32>, i32 -> vector<4x16x16xf32>
    %cst_62 = arith.constant 0.000000e+00 : f32
    %180 = vector.shape_cast %7 : vector<1x16x1xi1> to vector<1x16x1xi1>
    %181 = vector.broadcast %180 : vector<1x16x1xi1> to vector<4x16x16xi1>
    %182 = vector.broadcast %cst_62 : f32 to vector<4x16x16xf32>
    %183 = arith.select %181, %179, %182 : vector<4x16x16xi1>, vector<4x16x16xf32>
    %184 = arith.maximumf %178, %183 : vector<4x16x16xf32>
    %c1_i32_63 = arith.constant 1 : i32
    %185 = tpu.dynamic_rotate %178 by %c1_i32_63 dim 1 : vector<4x16x16xf32>, i32 -> vector<4x16x16xf32>
    %cst_64 = arith.constant 0.000000e+00 : f32
    %186 = vector.shape_cast %9 : vector<1x16x1xi1> to vector<1x16x1xi1>
    %187 = vector.broadcast %186 : vector<1x16x1xi1> to vector<4x16x16xi1>
    %188 = vector.broadcast %cst_64 : f32 to vector<4x16x16xf32>
    %189 = arith.select %187, %185, %188 : vector<4x16x16xi1>, vector<4x16x16xf32>
    %190 = arith.maximumf %184, %189 : vector<4x16x16xf32>
    %c15_i32_65 = arith.constant 15 : i32
    %191 = tpu.dynamic_rotate %178 by %c15_i32_65 dim 1 : vector<4x16x16xf32>, i32 -> vector<4x16x16xf32>
    %cst_66 = arith.constant 0.000000e+00 : f32
    %192 = vector.shape_cast %11 : vector<1x16x1xi1> to vector<1x16x1xi1>
    %193 = vector.broadcast %192 : vector<1x16x1xi1> to vector<4x16x16xi1>
    %194 = vector.broadcast %cst_66 : f32 to vector<4x16x16xf32>
    %195 = arith.select %193, %191, %194 : vector<4x16x16xi1>, vector<4x16x16xf32>
    %196 = arith.maximumf %190, %195 : vector<4x16x16xf32>
    %c14_i32_67 = arith.constant 14 : i32
    %197 = tpu.dynamic_rotate %178 by %c14_i32_67 dim 1 : vector<4x16x16xf32>, i32 -> vector<4x16x16xf32>
    %cst_68 = arith.constant 0.000000e+00 : f32
    %198 = vector.shape_cast %13 : vector<1x16x1xi1> to vector<1x16x1xi1>
    %199 = vector.broadcast %198 : vector<1x16x1xi1> to vector<4x16x16xi1>
    %200 = vector.broadcast %cst_68 : f32 to vector<4x16x16xf32>
    %201 = arith.select %199, %197, %200 : vector<4x16x16xi1>, vector<4x16x16xf32>
    %202 = arith.maximumf %196, %201 : vector<4x16x16xf32>
    %203 = arith.mulf %202, %95 : vector<4x16x16xf32>
    %cst_69 = arith.constant 1.000000e+00 : f32
    %204 = vector.broadcast %cst_69 : f32 to vector<16x1xf32>
    %205 = vector.shape_cast %203 : vector<4x16x16xf32> to vector<64x16xf32>
    %cst_70 = arith.constant dense<0.000000e+00> : vector<64x1xf32>
    %206 = tpu.matmul %205, %204, %cst_70 {dimension_numbers = #tpu.dot_dimension_numbers<[1], [0], [0], [1], [0, 0, 1, 1], [], []>} : vector<64x16xf32>, vector<16x1xf32>, vector<64x1xf32> -> vector<64x1xf32>
    %207 = vector.shape_cast %206 : vector<64x1xf32> to vector<4x16x1xf32>
    %cst_71 = arith.constant dense<0.000000e+00> : vector<4x1xf32>
    %208 = vector.multi_reduction <add>, %207, %cst_71 [1] : vector<4x16x1xf32> to vector<4x1xf32>
    %cst_72 = arith.constant 0.000000e+00 : f32
    %209 = vector.broadcast %cst_72 : f32 to vector<4x124xf32>
    %210 = tpu.concatenate %154, %70, %208, %100, %209 in 1 : vector<4x1xf32>, vector<4x1xf32>, vector<4x1xf32>, vector<4x1xf32>, vector<4x124xf32> -> vector<4x128xf32>
    %c0_73 = arith.constant 0 : index
    %c0_74 = arith.constant 0 : index
    %c0_75 = arith.constant 0 : index
    %211 = vector.load %arg3[%c0_73, %c0_74, %c0_75] : memref<1x4x128xf32, #tpu.memory_space<vmem>>, vector<1x4x128xf32>
    %212 = vector.shape_cast %211 : vector<1x4x128xf32> to vector<4x128xf32>
    %213 = vector.shape_cast %210 : vector<4x128xf32> to vector<1x4x128xf32>
    tpu.vector_store %arg3[%c0_73, %c0_74, %c0_75], %213 {strides = array<i32>} : memref<1x4x128xf32, #tpu.memory_space<vmem>>, vector<1x4x128xf32>,
    return
  }
  func.func @transform_0(%arg0: i32) -> (i32, i32, i32, i32) {
    %c0_i32 = arith.constant 0 : i32
    %c0_i32_0 = arith.constant 0 : i32
    %c0_i32_1 = arith.constant 0 : i32
    %c0_i32_2 = arith.constant 0 : i32
    return %arg0, %c0_i32, %c0_i32_0, %c0_i32_1 : i32, i32, i32, i32
  }
  func.func @transform_1(%arg0: i32) -> (i32, i32, i32) {
    %c0_i32 = arith.constant 0 : i32
    %c0_i32_0 = arith.constant 0 : i32
    %c0_i32_1 = arith.constant 0 : i32
    return %arg0, %c0_i32, %c0_i32_0 : i32, i32, i32
  }
  func.func @transform_2(%arg0: i32) -> (i32, i32, i32) {
    %c0_i32 = arith.constant 0 : i32
    %c0_i32_0 = arith.constant 0 : i32
    %c0_i32_1 = arith.constant 0 : i32
    return %arg0, %c0_i32, %c0_i32_0 : i32, i32, i32
  }
}

</mosaic_0001>

<bundles_post_ra>
// kernel: tpu_custom_call.1
= control target key start
LH: loop header
LB: loop body
LE: loop exit
PB: predicated region body
PF: predicated region fallthrough
CT: control target
= control target key end

     0   :  { %7 = vsyncpa [#allocation3], 0  ;;  %s4115_s0 = inlined_call_operand.hbm [shape: f32[2,4,16,16], index: 0, kind: input, shape index: {}]   ;;  %s4116_s1 = inlined_call_operand.hbm [shape: s32[2,16,16], index: 1, kind: input, shape index: {}]   ;;  %s4117_s2 = inlined_call_operand.hbm [shape: f32[2,4,128], index: 2, kind: output, shape index: {}]  }
   0x1   :  { %9 = vsyncpa [#allocation3 + $0x1], 0 }
   0x2   :  { %10 = vsyncpa [#allocation6], 0 }
   0x3   :  { %12 = vsyncpa [#allocation6 + $0x1], 0 }
   0x4   :  { %13 = vsyncpa [#allocation4], 0 }
   0x5   :  { %15 = vsyncpa [#allocation4 + $0x1], 0  ;;  %s2786_s9 = smov 0   ;;  %s2788_s10 = smov 0  }
   0x6   :  { %s2790_s11 = smov 0   ;;  %s2792_s12 = smov 0  }
   0x7 LB: > { %s2807_s13 = sadd.s32 4294967295, %s2754_s12   ;;  %s2290_s14 = sadd.s32 4294967294, %s2754_s12   ;;  %s2754_s12 = sphi %s2792_s12, %s4136_s12   ;;  %s2750_s11 = sphi %s2790_s11, %s4135_s11   ;;  %s2746_s10 = sphi %s2788_s10, %s4134_s10   ;;  %s2742_s9 = sphi %s2786_s9, %s4133_s9  }
   0x8   : > { %s2811_s15 = sadd.s32 1, %s2754_s12   ;;  %s28_s16 = sadd.s32 1, %s2750_s11 }
   0x9   : > { %s25_s17 = ssub.s32 %s2754_s12, %s2811_s15  ;;  %p35_p0 = scmp.ne.s32.totalorder %s2750_s11, %s2746_s10 }
   0xa   : > { %p26_p1 = scmp.eq.s32.totalorder %s25_s17, 0  ;;  %p36_p2 = scmp.eq.s32.totalorder %s2754_s12, 0 }
   0xb   : > { %p41_p3 = scmp.ne.s32.totalorder %s2746_s10, %s2742_s9  ;;  %p42_p4 = scmp.eq.s32.totalorder %s2807_s13, 0 }
   0xc   : > { %s2823_s18 = scalar_select %p26_p1, %s2750_s11, %s28_s16  }
   0xd   : > { %p2825_p5 = por %p36_p2, %p35_p0  ;;  %p2829_p6 = por %p42_p4, %p41_p3 }
   0xe   : > { %p91_p7 = scmp.eq.s32.totalorder %s2807_s13, 1  ;;  %p97_p8 = scmp.eq.s32.totalorder %s2290_s14, 1 }
   0xf   : > { %s4122_s20 = scalar_select %p2829_p6, 1, 0 }
  0x10   : > { %p2478_p10 = scmp.lt.s32.totalorder %s2754_s12, 2  ;;  %p2836_p11 = por %p91_p7, %p35_p0 }
  0x11   : > { %p2840_p12 = por %p97_p8, %p41_p3  ;;  %s2845_s23 = sand.u32 1, %s2750_s11  }
  0x12   : > { %s4123_s21 = scalar_select %p2836_p11, 1, 0 }
  0x13   : > { %s4124_s22 = scalar_select %p2840_p12, 1, 0 }
  0x14   : > { %s2347_s24 = sshll.u32 %s2754_s12, 10  ;;  %s2293_s25 = sshll.u32 %s2845_s23, 6 }
  0x15   : > { %s2852_s28 = scalar_lea.hbm %s4115_s0, %s2347_s24  ;;  %s121_s29 = scalar_lea.vmem [#allocation2], %s2293_s25 }
  0x16   : > { %s128_s30 = sshll.u32 %s121_s29, 4  ;;  %p2856_p13 = pnand %p2478_p10, %p2825_p5  ;;  %s2860_s30 = int_to_ptr.vmem [resolvable:$true] %s128_s30 }
  0x17   : > { %s118_s4 = scalar_lea.sflag [#allocation3], %s2845_s23  ;;  %s2624_s5 = scalar_lea.hbm %s2852_s28, 1024 }
  0x18   : > { %p2625_p0 = scmp.ne.s32.totalorder %s2852_s28, %s2624_s5  ;;  %p2626_p1 = pneg %p2856_p13 }
  0x19   : > { %s2629_s8 = scalar_lea.hbm %s4115_s0, 2048  ;;  %p2630_p4 = scmp.lt.u32.totalorder %s2852_s28, %s4115_s0 }
  0x1a   : > { %p2627_p2 = pnand %p2626_p1, %p2625_p0  ;;  %p2631_p5 = scmp.lt.u32.totalorder %s2629_s8, %s2624_s5 }
  0x1b   : > { %p2633_p8 = scmp.lt.u32.totalorder %s2624_s5, %s2852_s28 }
  0x1c   : > { %p2628_p3 = pneg %p2627_p2  ;;  %p2632_p7 = por %p2631_p5, %p2630_p4 }
  0x1e   : > { %p2634_p10 = por %p2633_p8, %p2632_p7 }
  0x20   : > { %p2635_p9 = pnand %p2634_p10, %p2628_p3 }
  0x22   : > { %2638 = shalt.err (!%p2635_p9)
}
  0x23   : > { %s2639_s17 = scalar_lea.vmem %s2860_s30, 1024  ;;  %s2756_s19 = smov [#allocation2]  }
  0x24   : > { %p2640_p0 = scmp.ne.s32.totalorder %s2860_s30, %s2639_s17  ;;  %s2644_s24 = sshll.u32 %s2756_s19, 4  ;;  %s2645_s24 = int_to_ptr.vmem [resolvable:$false] %s2644_s24 }
  0x25   : > { %s2646_s25 = scalar_lea.vmem %s2645_s24, 2048  ;;  %p2647_p11 = scmp.lt.s32.totalorder %s2860_s30, %s2645_s24 }
  0x26   : > { %p2642_p2 = pnand %p2640_p0, %p2626_p1  ;;  %p2648_p4 = scmp.lt.s32.totalorder %s2646_s25, %s2639_s17 }
  0x28   : > { %p2643_p12 = pneg %p2642_p2  ;;  %p2649_p5 = por %p2648_p4, %p2647_p11 }
  0x2a   : > { %p2650_p7 = pnand %p2649_p5, %p2643_p12 }
  0x2c   : > { %2653 = shalt.err (!%p2650_p7)
}
  0x2d   : > { %s2757_s26 = smov 128   ;;  %s2758_s27 = smov 8  }
  0x2e   : > { %2470 = dma.hbm_to_vmem [thread:$0]  (!%p2856_p13), %s2852_s28, 1024, %s2860_s30, %s118_s4, %s2757_s26, %s2757_s26, %s2758_s27  }
  0x2f   : > { %p2299_p9 = scmp.ge.s32.totalorder %s2754_s12, 1  ;;  %p157_p11 = scmp.lt.s32.totalorder %s2754_s12, 3 }
  0x30   : > { %s2296_s29 = sshll.u32 %s2845_s23, 4  ;;  %s2348_s6 = sshll.u32 %s2754_s12, 8 }
  0x31   : > { %p2896_p12 = pnand %p2299_p9, %p157_p11  ;;  %s142_s7 = scalar_lea.vmem [#allocation5], %s2296_s29 }
  0x32   : > { %s149_s8 = sshll.u32 %s142_s7, 4  ;;  %s2904_s17 = scalar_lea.hbm %s4116_s1, %s2348_s6  ;;  %s2906_s8 = int_to_ptr.vmem [resolvable:$true] %s149_s8 }
  0x33   : > { %s139_s28 = scalar_lea.sflag [#allocation6], %s2845_s23  ;;  %s2654_s30 = scalar_lea.hbm %s2904_s17, 256 }
  0x34   : > { %p2655_p3 = scmp.ne.s32.totalorder %s2904_s17, %s2654_s30  ;;  %s2659_s24 = scalar_lea.hbm %s4116_s1, 512 }
  0x35   : > { %p2660_p0 = scmp.lt.u32.totalorder %s2904_s17, %s4116_s1  ;;  %p2661_p2 = scmp.lt.u32.totalorder %s2659_s24, %s2654_s30 }
  0x36   : > { %p2657_p8 = pnand %p2655_p3, %p2626_p1  ;;  %p2663_p5 = scmp.lt.u32.totalorder %s2654_s30, %s2904_s17 }
  0x37   : > { %p2662_p4 = por %p2661_p2, %p2660_p0 }
  0x38   : > { %p2658_p10 = pneg %p2657_p8 }
  0x39   : > { %p2664_p7 = por %p2663_p5, %p2662_p4 }
  0x3b   : > { %p2665_p9 = pnand %p2664_p7, %p2658_p10 }
  0x3d   : > { %2668 = shalt.err (!%p2665_p9)
}
  0x3e   : > { %s2669_s6 = scalar_lea.vmem %s2906_s8, 256  ;;  %s2759_s7 = smov [#allocation5]  }
  0x3f   : > { %p2670_p11 = scmp.ne.s32.totalorder %s2906_s8, %s2669_s6  ;;  %s2674_s14 = sshll.u32 %s2759_s7, 4  ;;  %s2675_s14 = int_to_ptr.vmem [resolvable:$false] %s2674_s14 }
  0x40   : > { %s2676_s16 = scalar_lea.vmem %s2675_s14, 512  ;;  %p2677_p6 = scmp.lt.s32.totalorder %s2906_s8, %s2675_s14 }
  0x41   : > { %p2672_p3 = pnand %p2670_p11, %p2626_p1  ;;  %p2678_p0 = scmp.lt.s32.totalorder %s2676_s16, %s2669_s6 }
  0x43   : > { %p2673_p8 = pneg %p2672_p3  ;;  %p2679_p2 = por %p2678_p0, %p2677_p6 }
  0x45   : > { %p2680_p4 = pnand %p2679_p2, %p2673_p8 }
  0x47   : > { %2683 = shalt.err (!%p2680_p4)
}
  0x48   : > { %2473 = dma.hbm_to_vmem [thread:$0]  (!%p2856_p13), %s2904_s17, 256, %s2906_s8, %s139_s28, %s2757_s26, %s2757_s26, %s2758_s27  }
  0x49   : > { %161 = sbr.rel (%p2896_p12) target bundleno = 1340 (0x53c), region = 28  ;;  %s2940_s30 = sand.u32 (!%p2896_p12), 1, %s2746_s10  }
  0x4a   : > { %s2300_s4 = sshll.u32 (!%p2896_p12), %s2940_s30, 6  ;;  %s164_s19 = scalar_lea.sflag (!%p2896_p12), [#allocation3], %s2940_s30 }
  0x4b   : > { %s167_s3 = scalar_lea.vmem (!%p2896_p12), [#allocation2], %s2300_s4  ;;  %p4127_p6 = scmp.ne.s32.totalorder (!%p2896_p12), %s4122_s20, 0 }
  0x50   : > { %2729 = dma.done.wait (%p4127_p6), %s164_s19, 1024  }
  0x51   : > { %2731 = vsyncadd (%p4127_p6), %s164_s19, 4294966272  ;;  %s2301_s23 = sshll.u32 %s2940_s30, 4  ;;  %s173_s26 = scalar_lea.sflag [#allocation6], %s2940_s30 }
  0x52   : > { %s2950_s27 = scalar_lea.vmem [#allocation5], %s2301_s23 }
  0x53   : > { %2733 = dma.done.wait (%p4127_p6), %s173_s26, 256  }
  0x54   : > { %2735 = vsyncadd (%p4127_p6), %s173_s26, 4294967040  ;;  %vm229_vm0 = vcmask 130048   ;;  %v202_v0 = vld [vmem:[%s167_s3] sm:$0xff]  ;;  %v204_v1 = vld [vmem:[%s167_s3 + $0x10] sm:$0xff]  ;;  %s2760_s20 = smov 16   ;;  %vm324_vm9 = vcmask 1047680  }
  0x55   : > { %v206_v2 = vld [vmem:[%s167_s3 + $0x20] sm:$0xff]  ;;  %v208_v3 = vld [vmem:[%s167_s3 + $0x30] sm:$0xff]  ;;  %v230_v4 = vsel %vm229_vm0, %v202_v0, -inf  ;;  %v231_v5 = vsel %vm229_vm0, %v204_v1, -inf  ;;  %v203_v7 = vld [vmem:[%s167_s3 + $0x8] sm:$0xff]  ;;  %s2762_s5 = smov 113  }
  0x56   : > { %v232_v6 = vsel %vm229_vm0, %v206_v2, -inf  ;;  %v205_v8 = vld [vmem:[%s167_s3 + $0x18] sm:$0xff]  ;;  %v234_v10 = vsel %vm229_vm0, %v208_v3, -inf  ;;  %v207_v11 = vld [vmem:[%s167_s3 + $0x28] sm:$0xff]  ;;  %v237_v13 = vsel %vm229_vm0, %v203_v7, -inf  ;;  %s2763_s8 = smov 127  }
  0x57   : > { %v233_v9 = vmax.f32 %v230_v4, %v232_v6  ;;  %v209_v12 = vld [vmem:[%s167_s3 + $0x38] sm:$0xff]  ;;  %v238_v14 = vsel %vm229_vm0, %v205_v8, -inf  ;;  %v235_v15 = vmax.f32 %v231_v5, %v234_v10  ;;  %v239_v16 = vsel %vm229_vm0, %v207_v11, -inf  ;;  %s2765_s17 = smov 114   ;;  %s2766_s28 = smov 126  }
  0x58   : > { %v241_v17 = vsel %vm229_vm0, %v209_v12, -inf  ;;  %v240_v18 = vmax.f32 %v237_v13, %v239_v16  ;;  %v2761_v16 = vmov 0.0   ;;  %s2767_s24 = smov 1   ;;  %s2768_s25 = smov 3  }
  0x59   : > { %v242_v19 = vmax.f32 %v238_v14, %v241_v17  ;;  %v236_v20 = vmax.f32 %v233_v9, %v235_v15  ;;  %v211_v9 = vld [vmem:[%s2950_s27 + $0x8] sm:$0xff]  ;;  %s2769_s29 = smov 2   ;;  %s2302_s6 = sshll.u32 %s2940_s30, 2 }
  0x5a   : > { %vm293_vm2 = vcmp.ne.s32.totalorder %v211_v9, 0  ;;  %vm295_vm4 = vcmp.ne.s32.totalorder %v211_v9, 1  ;;  %vm297_vm6 = vcmp.ne.s32.totalorder %v211_v9, 2  ;;  %vm299_vm8 = vcmp.ne.s32.totalorder %v211_v9, 3  ;;  %s2344_s7 = sshll.u32 %s2807_s13, 6  ;;  %s201_s14 = scalar_lea.vmem [#allocation7], %s2302_s6 }
  0x5b   : > { %v243_v21 = vmax.f32 %v240_v18, %v242_v19  ;;  %v244_v22 = vsub.f32 %v202_v0, %v236_v20  ;;  %v246_v23 = vsub.f32 %v204_v1, %v236_v20  ;;  %v248_v24 = vsub.f32 %v206_v2, %v236_v20  ;;  %s2197_s16 = sshll.u32 %s201_s14, 4  ;;  %s4071_s3 = scalar_lea.hbm %s4117_s2, %s2344_s7  ;;  %s4073_s16 = int_to_ptr.vmem [resolvable:$true] %s2197_s16 }
  0x5c   : > { %v250_v25 = vsub.f32 %v208_v3, %v236_v20  ;;  %v3004_v18 = vsel %vm293_vm2, 1.0, %v2761_v16  ;;  %v3008_v20 = vsel %vm295_vm4, 1.0, %v2761_v16  ;;  %vm2138_vm2 = vcmask 1041409   ;;  %s2184_s13 = scalar_lea.sflag [#allocation4], %s2940_s30  ;;  %s2684_s23 = scalar_lea.vmem %s4073_s16, 64 }
  0x5d   : > { %v245_v26 = vsub.f32 %v203_v7, %v243_v21  ;;  %v247_v27 = vsub.f32 %v205_v8, %v243_v21  ;;  %v252_v28 = vmul.f32 1.442695, %v244_v22  ;;  %v256_v29 = vmul.f32 1.442695, %v246_v23  ;;  %v210_v8 = vld [vmem:[%s2950_s27] sm:$0xff]  ;;  %p2685_p13 = scmp.ne.s32.totalorder %s4073_s16, %s2684_s23  ;;  %p4130_p1 = scmp.ne.s32.totalorder %s4123_s21, 0 }
  0x5e   : > { %v260_v30 = vmul.f32 1.442695, %v248_v24  ;;  %v249_v31 = vsub.f32 %v207_v11, %v243_v21  ;;  %v264_v32 = vmul.f32 1.442695, %v250_v25  ;;  %v251_v33 = vsub.f32 %v209_v12, %v243_v21  ;;  %s2770_s26 = smov [#allocation7]  }
  0x5f   : > { %2604 = vpow2.f32 %v252_v28  ;;  %v254_v34 = vmul.f32 1.442695, %v245_v26  ;;  %v258_v35 = vmul.f32 1.442695, %v247_v27  ;;  %vm292_vm1 = vcmp.ne.s32.totalorder %v210_v8, 0  ;;  %p2686_p12 = pnand %p2685_p13, %p4130_p1  ;;  %s2688_s27 = sshll.u32 %s2770_s26, 4  ;;  %s2689_s27 = int_to_ptr.vmem [resolvable:$false] %s2688_s27 }
  0x60   : > { %2606 = vpow2.f32 %v256_v29  ;;  %v262_v36 = vmul.f32 1.442695, %v249_v31  ;;  %v266_v37 = vmul.f32 1.442695, %v251_v33  ;;  %vm294_vm3 = vcmp.ne.s32.totalorder %v210_v8, 1  ;;  %p2691_p5 = scmp.lt.s32.totalorder %s4073_s16, %s2689_s27 }
  0x61   : > { %2608 = vpow2.f32 %v260_v30  ;;  %v3002_v17 = vsel %vm292_vm1, 1.0, %v2761_v16  ;;  %v3006_v19 = vsel %vm294_vm3, 1.0, %v2761_v16  ;;  %vm296_vm5 = vcmp.ne.s32.totalorder %v210_v8, 2  ;;  %p2687_p10 = pneg %p2686_p12 }
  0x62   : > { %2610 = vpow2.f32 %v264_v32  ;;  %vm298_vm7 = vcmp.ne.s32.totalorder %v210_v8, 3  ;;  %v2524_v21 = vpack.i.bf16 %v3004_v18, %v3002_v17  ;;  %v2529_v22 = vpack.i.bf16 %v3008_v20, %v3006_v19 }
  0x63   : > { %2612 = vpow2.f32 %v254_v34  ;;  %v3018_v23 = vsel %vm296_vm5, 1.0, %v2761_v16  ;;  %v3020_v24 = vsel %vm297_vm6, 1.0, %v2761_v16  ;;  %v3022_v25 = vsel %vm298_vm7, 1.0, %v2761_v16 }
  0x64   : > { %2614 = vpow2.f32 %v258_v35  ;;  %v3024_v26 = vsel %vm299_vm8, 1.0, %v2761_v16  ;;  %v2534_v27 = vpack.i.bf16 %v3020_v24, %v3018_v23  ;;  %vm676_vm1 = vcmask 7168  }
  0x65   : > { %2616 = vpow2.f32 %v262_v36  ;;  %v2539_v28 = vpack.i.bf16 %v3024_v26, %v3022_v25  ;;  %vm2140_vm3 = vcmask 1042434   ;;  %vm4120_vm4 = vcmask 1043459  }
  0x66   : > { %2618 = vpow2.f32 %v266_v37 }
  0x69   : > { %v2605_v38 = vpop.eup %2604 }
  0x6a   : > { %v2607_v39 = vpop.eup %2606  ;;  %v268_v40 = vsel %vm229_vm0, %v2605_v38, 0.0 }
  0x6b   : > { %v2609_v41 = vpop.eup %2608  ;;  %v269_v42 = vsel %vm229_vm0, %v2607_v39, 0.0 }
  0x6c   : > { %v2611_v43 = vpop.eup %2610  ;;  %v270_v44 = vadd.f32 %v269_v42, %v268_v40  ;;  %v271_v45 = vsel %vm229_vm0, %v2609_v41, 0.0 }
  0x6d   : > { %v2613_v46 = vpop.eup %2612  ;;  %v273_v47 = vsel %vm229_vm0, %v2611_v43, 0.0 }
  0x6e   : > { %v2615_v48 = vpop.eup %2614  ;;  %v272_v49 = vadd.f32 %v271_v45, %v270_v44  ;;  %v275_v50 = vsel %vm229_vm0, %v2613_v46, 0.0 }
  0x6f   : > { %v2617_v51 = vpop.eup %2616  ;;  %v276_v52 = vsel %vm229_vm0, %v2615_v48, 0.0 }
  0x70   : > { %v2619_v53 = vpop.eup %2618  ;;  %v274_v54 = vadd.f32 %v273_v47, %v272_v49  ;;  %v277_v55 = vadd.f32 %v276_v52, %v275_v50  ;;  %v278_v56 = vsel %vm229_vm0, %v2617_v51, 0.0 }
  0x71   : > { %v280_v57 = vsel %vm229_vm0, %v2619_v53, 0.0 }
  0x72   : > { %2620 = vrcp.f32 %v274_v54  ;;  %v279_v58 = vadd.f32 %v278_v56, %v277_v55 }
  0x74   : > { %v281_v59 = vadd.f32 %v280_v57, %v279_v58 }
  0x76   : > { %2622 = vrcp.f32 %v281_v59 }
  0x7c   : > { %v2621_v60 = vpop.eup %2620 }
  0x7d   : > { %v284_v61 = vmul.f32 %v2621_v60, %v2605_v38  ;;  %v286_v62 = vmul.f32 %v2621_v60, %v2607_v39  ;;  %v288_v2 = vmul.f32 %v2621_v60, %v2609_v41  ;;  %v290_v13 = vmul.f32 %v2621_v60, %v2611_v43 }
  0x7f   : > { %v2972_v63 = vsub.f32 1.0, %v284_v61  ;;  %v2974_v0 = vsub.f32 1.0, %v286_v62  ;;  %v2990_v10 = vsub.f32 1.0, %v288_v2  ;;  %v3000_v15 = vsub.f32 1.0, %v290_v13 }
  0x80   : > { %v2623_v1 = vpop.eup %2622 }
  0x81   : > { %325 = vrot.lane.b32.xlu0 %v2972_v63, %s2760_s20  ;;  %331 = vrot.lane.b32.xlu1 %v2974_v0, %s2760_s20  ;;  %v285_v3 = vmul.f32 %v2623_v1, %v2613_v46  ;;  %v287_v4 = vmul.f32 %v2623_v1, %v2615_v48  ;;  %v289_v5 = vmul.f32 %v2623_v1, %v2617_v51 }
  0x82   : > { %v291_v12 = vmul.f32 %v2623_v1, %v2619_v53 }
  0x83   : > { %v2980_v6 = vsub.f32 1.0, %v285_v3  ;;  %v2982_v7 = vsub.f32 1.0, %v287_v4  ;;  %v2992_v11 = vsub.f32 1.0, %v289_v5 }
  0x84   : > { %v2998_v14 = vsub.f32 1.0, %v291_v12 }
  0x85   : > { %328 = vrot.lane.b32.xlu0 %v2980_v6, %s2760_s20  ;;  %334 = vrot.lane.b32.xlu1 %v2982_v7, %s2760_s20 }
  0x89   : > { %337 = vrot.lane.b32.xlu0 %v2990_v10, %s2760_s20  ;;  %340 = vrot.lane.b32.xlu1 %v2992_v11, %s2760_s20 }
  0x8d   : > { %346 = vrot.lane.b32.xlu1 %v2998_v14, %s2760_s20  ;;  %343 = vrot.lane.b32.xlu0 %v3000_v15, %s2760_s20 }
  0x91   : > { %2525 = vrot.lane.b32.xlu0 %v2524_v21, %s2760_s20  ;;  %2530 = vrot.lane.b32.xlu1 %v2529_v22, %s2760_s20 }
  0x95   : > { %2535 = vrot.lane.b32.xlu0 %v2534_v27, %s2760_s20  ;;  %2540 = vrot.lane.b32.xlu1 %v2539_v28, %s2760_s20  ;;  %v2764_v28 = vmov 1.0|1.0  }
  0x96   : > { %2453 = vmatprep.subr.bf16.mxu0 %v2764_v28  ;;  %2455 = vmatprep.subr.bf16.mxu1 %v2764_v28 }
  0x97   : > { %2454 = vmatpush3.bf16.msra.mxu0 %v2764_v28  ;;  %2456 = vmatpush3.bf16.msra.mxu1 %v2764_v28 }
  0x98   : > { %2459 = vmatprep.subr.bf16.mxu1 %v2764_v28  ;;  %2457 = vmatprep.subr.bf16.mxu0 %v2764_v28 }
  0xf3   : > { %v326_v29 = vpop.permute.xlu0 %325  ;;  %v332_v30 = vpop.permute.xlu1 %331 }
  0xf4   : > { %v327_v31 = vsel %vm324_vm9, %v326_v29, %v2972_v63  ;;  %v333_v36 = vsel %vm324_vm9, %v332_v30, %v2974_v0 }
  0xf5   : > { %349 = vrot.lane.b32.xlu1 %v327_v31, %s2760_s20 }
  0xf7   : > { %v329_v32 = vpop.permute.xlu0 %328  ;;  %v335_v33 = vpop.permute.xlu1 %334 }
  0xf8   : > { %v330_v34 = vsel %vm324_vm9, %v329_v32, %v2980_v6  ;;  %v336_v35 = vsel %vm324_vm9, %v335_v33, %v2982_v7 }
  0xf9   : > { %351 = vrot.lane.b32.xlu0 %v330_v34, %s2760_s20  ;;  %355 = vrot.lane.b32.xlu1 %v336_v35, %s2760_s20 }
  0xfb   : > { %v338_v37 = vpop.permute.xlu0 %337  ;;  %v341_v38 = vpop.permute.xlu1 %340 }
  0xfc   : > { %v339_v39 = vsel %vm324_vm9, %v338_v37, %v2990_v10  ;;  %v342_v40 = vsel %vm324_vm9, %v341_v38, %v2992_v11 }
  0xfd   : > { %353 = vrot.lane.b32.xlu0 %v333_v36, %s2760_s20  ;;  %357 = vrot.lane.b32.xlu1 %v339_v39, %s2760_s20 }
  0xff   : > { %v347_v41 = vpop.permute.xlu1 %346  ;;  %v344_v42 = vpop.permute.xlu0 %343 }
 0x100   : > { %v348_v43 = vsel %vm324_vm9, %v347_v41, %v2998_v14  ;;  %v345_v44 = vsel %vm324_vm9, %v344_v42, %v3000_v15 }
 0x101   : > { %359 = vrot.lane.b32.xlu0 %v342_v40, %s2760_s20  ;;  %363 = vrot.lane.b32.xlu1 %v348_v43, %s2760_s20 }
 0x103   : > { %v2526_v45 = vpop.permute.xlu0 %2525  ;;  %v2531_v46 = vpop.permute.xlu1 %2530 }
 0x104   : > { %v2528_v47 = vunpack.i.h.bf16 %v2526_v45  ;;  %v2527_v48 = vunpack.i.l.bf16 %v2526_v45  ;;  %v2533_v49 = vunpack.i.h.bf16 %v2531_v46  ;;  %v2532_v50 = vunpack.i.l.bf16 %v2531_v46 }
 0x105   : > { %361 = vrot.lane.b32.xlu0 %v345_v44, %s2760_s20 }
 0x106   : > { %v715_v51 = vsel %vm324_vm9, %v2527_v48, %v3002_v17  ;;  %v718_v52 = vsel %vm324_vm9, %v2528_v47, %v3004_v18  ;;  %v721_v53 = vsel %vm324_vm9, %v2532_v50, %v3006_v19  ;;  %v724_v54 = vsel %vm324_vm9, %v2533_v49, %v3008_v20 }
 0x107   : > { %v2544_v55 = vpack.i.bf16 %v718_v52, %v715_v51  ;;  %v2536_v56 = vpop.permute.xlu0 %2535  ;;  %v2549_v57 = vpack.i.bf16 %v724_v54, %v721_v53  ;;  %v2541_v58 = vpop.permute.xlu1 %2540 }
 0x108   : > { %v2538_v59 = vunpack.i.h.bf16 %v2536_v56  ;;  %v2537_v60 = vunpack.i.l.bf16 %v2536_v56  ;;  %v2543_v61 = vunpack.i.h.bf16 %v2541_v58  ;;  %v2542_v62 = vunpack.i.l.bf16 %v2541_v58 }
 0x109   : > { %2545 = vrot.lane.b32.xlu0 %v2544_v55, %s2760_s20  ;;  %2550 = vrot.lane.b32.xlu1 %v2549_v57, %s2760_s20 }
 0x10a   : > { %v727_v1 = vsel %vm324_vm9, %v2537_v60, %v3018_v23  ;;  %v730_v2 = vsel %vm324_vm9, %v2538_v59, %v3020_v24  ;;  %v733_v3 = vsel %vm324_vm9, %v2542_v62, %v3022_v25  ;;  %v736_v4 = vsel %vm324_vm9, %v2543_v61, %v3024_v26 }
 0x10b   : > { %v2554_v5 = vpack.i.bf16 %v730_v2, %v727_v1  ;;  %v2559_v8 = vpack.i.bf16 %v736_v4, %v733_v3  ;;  %v212_v62 = vlaneseq }
 0x10d   : > { %2555 = vrot.lane.b32.xlu0 %v2554_v5, %s2760_s20  ;;  %2560 = vrot.lane.b32.xlu1 %v2559_v8, %s2760_s20  ;;  %v3140_v1 = vand.u32 127, %v212_v62  ;;  %v3146_v4 = vshrl.u32 %v212_v62, 7 }
 0x10f   : > { %vm226_vm10 = vcmp.ge.s32.totalorder %v3140_v1, 1  ;;  %vm227_vm11 = vcmp.lt.s32.totalorder %v3140_v1, 15  ;;  %vm219_vm12 = vcmp.ge.s32.totalorder %v3146_v4, 1  ;;  %vm473_vm14 = vcmp.lt.s32.totalorder %v3146_v4, 1 }
 0x110   : > { %vm510_vm15 = vcmp.lt.s32.totalorder %v3146_v4, 7  ;;  %vm225_vm5 = vcmp.ge.s32.totalorder %v3140_v1, 2  ;;  %vm228_vm6 = vcmp.lt.s32.totalorder %v3140_v1, 14  ;;  %vm217_vm7 = vcmp.ge.s32.totalorder %v3146_v4, 2 }
 0x111   : > { %vm1314_vm8 = vcmp.lt.s32.totalorder %v3146_v4, 2 }
 0x167   : > { %v350_v9 = vpop.permute.xlu1 %349 }
 0x168   : > { %v365_v12 = vsel %vm324_vm9, %v350_v9, %v2972_v63 }
 0x169   : > { %383 = vrot.lane.b32.xlu1 %v365_v12, %s2762_s5 }
 0x16b   : > { %v352_v13 = vpop.permute.xlu0 %351  ;;  %v356_v16 = vpop.permute.xlu1 %355 }
 0x16c   : > { %v366_v21 = vsel %vm324_vm9, %v352_v13, %v2980_v6  ;;  %v368_v22 = vsel %vm324_vm9, %v356_v16, %v2982_v7 }
 0x16d   : > { %425 = vrot.lane.b32.xlu1 %v365_v12, %s2763_s8  ;;  %385 = vrot.lane.b32.xlu0 %v366_v21, %s2762_s5 }
 0x16f   : > { %v354_v27 = vpop.permute.xlu0 %353  ;;  %v358_v29 = vpop.permute.xlu1 %357 }
 0x170   : > { %v367_v31 = vsel %vm324_vm9, %v354_v27, %v2974_v0  ;;  %v369_v32 = vsel %vm324_vm9, %v358_v29, %v2990_v10 }
 0x171   : > { %389 = vrot.lane.b32.xlu1 %v368_v22, %s2762_s5  ;;  %427 = vrot.lane.b32.xlu0 %v366_v21, %s2763_s8  ;;  %v3154_v21 = vadd.s32 8, %v3146_v4 }
 0x173   : > { %v360_v30 = vpop.permute.xlu0 %359  ;;  %v364_v35 = vpop.permute.xlu1 %363  ;;  %vm222_vm13 = vcmp.lt.s32.totalorder %v3154_v21, 15 }
 0x174   : > { %v370_v34 = vsel %vm324_vm9, %v360_v30, %v2992_v11  ;;  %v372_v37 = vsel %vm324_vm9, %v364_v35, %v2998_v14 }
 0x175   : > { %431 = vrot.lane.b32.xlu1 %v368_v22, %s2763_s8  ;;  %387 = vrot.lane.b32.xlu0 %v367_v31, %s2762_s5 }
 0x177   : > { %v362_v33 = vpop.permute.xlu0 %361 }
 0x178   : > { %v371_v46 = vsel %vm324_vm9, %v362_v33, %v3000_v15 }
 0x179   : > { %391 = vrot.lane.b32.xlu1 %v369_v32, %s2762_s5  ;;  %429 = vrot.lane.b32.xlu0 %v367_v31, %s2763_s8 }
 0x17b   : > { %v2546_v36 = vpop.permute.xlu0 %2545  ;;  %v2551_v40 = vpop.permute.xlu1 %2550 }
 0x17c   : > { %v2548_v38 = vunpack.i.h.bf16 %v2546_v36  ;;  %v2547_v39 = vunpack.i.l.bf16 %v2546_v36  ;;  %v2553_v41 = vunpack.i.h.bf16 %v2551_v40  ;;  %v2552_v42 = vunpack.i.l.bf16 %v2551_v40 }
 0x17d   : > { %433 = vrot.lane.b32.xlu1 %v369_v32, %s2763_s8  ;;  %393 = vrot.lane.b32.xlu0 %v370_v34, %s2762_s5 }
 0x17e   : > { %v753_v43 = vsel %vm324_vm9, %v2547_v39, %v3002_v17  ;;  %v754_v44 = vsel %vm324_vm9, %v2548_v38, %v3004_v18  ;;  %v755_v50 = vsel %vm324_vm9, %v2552_v42, %v3006_v19  ;;  %v756_v51 = vsel %vm324_vm9, %v2553_v41, %v3008_v20 }
 0x17f   : > { %v2556_v45 = vpop.permute.xlu0 %2555  ;;  %v2569_v47 = vpack.i.bf16 %v754_v44, %v753_v43  ;;  %v2561_v52 = vpop.permute.xlu1 %2560  ;;  %v2579_v53 = vpack.i.bf16 %v756_v51, %v755_v50 }
 0x180   : > { %v2558_v48 = vunpack.i.h.bf16 %v2556_v45  ;;  %v2557_v49 = vunpack.i.l.bf16 %v2556_v45  ;;  %v2563_v54 = vunpack.i.h.bf16 %v2561_v52  ;;  %v2562_v55 = vunpack.i.l.bf16 %v2561_v52 }
 0x181   : > { %397 = vrot.lane.b32.xlu1 %v372_v37, %s2762_s5  ;;  %435 = vrot.lane.b32.xlu0 %v370_v34, %s2763_s8 }
 0x182   : > { %v757_v56 = vsel %vm324_vm9, %v2557_v49, %v3018_v23  ;;  %v758_v57 = vsel %vm324_vm9, %v2558_v48, %v3020_v24  ;;  %v759_v59 = vsel %vm324_vm9, %v2562_v55, %v3022_v25  ;;  %v760_v60 = vsel %vm324_vm9, %v2563_v54, %v3024_v26 }
 0x183   : > { %v2589_v58 = vpack.i.bf16 %v758_v57, %v757_v56  ;;  %v2599_v61 = vpack.i.bf16 %v760_v60, %v759_v59 }
 0x185   : > { %439 = vrot.lane.b32.xlu1 %v372_v37, %s2763_s8  ;;  %395 = vrot.lane.b32.xlu0 %v371_v46, %s2762_s5 }
 0x189   : > { %437 = vrot.lane.b32.xlu0 %v371_v46, %s2763_s8  ;;  %2570 = vrot.lane.b32.xlu1 %v2569_v47, %s2763_s8 }
 0x18d   : > { %2565 = vrot.lane.b32.xlu0 %v2569_v47, %s2762_s5  ;;  %2580 = vrot.lane.b32.xlu1 %v2579_v53, %s2763_s8 }
 0x191   : > { %2575 = vrot.lane.b32.xlu0 %v2579_v53, %s2762_s5  ;;  %2590 = vrot.lane.b32.xlu1 %v2589_v58, %s2763_s8 }
 0x195   : > { %2585 = vrot.lane.b32.xlu0 %v2589_v58, %s2762_s5  ;;  %2600 = vrot.lane.b32.xlu1 %v2599_v61, %s2763_s8 }
 0x199   : > { %2595 = vrot.lane.b32.xlu0 %v2599_v61, %s2762_s5 }
 0x1db   : > { %v384_v2 = vpop.permute.xlu1 %383 }
 0x1dc   : > { %v407_v3 = vsel %vm226_vm10, %v384_v2, 0.0 }
 0x1dd   : > { %v415_v9 = vmax.f32 %v2972_v63, %v407_v3 }
 0x1df   : > { %v426_v5 = vpop.permute.xlu1 %425  ;;  %v386_v8 = vpop.permute.xlu0 %385 }
 0x1e0   : > { %v449_v12 = vsel %vm227_vm11, %v426_v5, 0.0  ;;  %v408_v13 = vsel %vm226_vm10, %v386_v8, 0.0 }
 0x1e1   : > { %v457_v16 = vmax.f32 %v415_v9, %v449_v12  ;;  %v416_v22 = vmax.f32 %v2980_v6, %v408_v13 }
 0x1e3   : > { %v390_v27 = vpop.permute.xlu1 %389  ;;  %v428_v29 = vpop.permute.xlu0 %427  ;;  %v465_v33 = vrot.slane %v457_v16, 7  ;;  %v502_v34 = vrot.slane %v457_v16, 1 }
 0x1e4   : > { %v410_v30 = vsel %vm226_vm10, %v390_v27, 0.0  ;;  %v450_v31 = vsel %vm227_vm11, %v428_v29, 0.0 }
 0x1e5   : > { %v458_v32 = vmax.f32 %v416_v22, %v450_v31  ;;  %v418_v35 = vmax.f32 %v2982_v7, %v410_v30 }
 0x1e7   : > { %v469_v36 = vrot.slane %v458_v32, 7  ;;  %v506_v37 = vrot.slane %v458_v32, 1  ;;  %v432_v38 = vpop.permute.xlu1 %431  ;;  %v388_v39 = vpop.permute.xlu0 %387 }
 0x1e8   : > { %v452_v40 = vsel %vm227_vm11, %v432_v38, 0.0  ;;  %v409_v44 = vsel %vm226_vm10, %v388_v39, 0.0 }
 0x1e9   : > { %v474_v41 = vsel %vm473_vm14, %v465_v33, %v469_v36  ;;  %v478_v42 = vsel %vm473_vm14, %v469_v36, %v465_v33  ;;  %v515_v43 = vsel %vm510_vm15, %v506_v37, %v502_v34  ;;  %v460_v49 = vmax.f32 %v418_v35, %v452_v40 }
 0x1ea   : > { %v486_v45 = vsel %vm219_vm12, %v478_v42, 0.0  ;;  %v495_v46 = vmax.f32 %v458_v32, %v474_v41  ;;  %v524_v47 = vsel %vm222_vm13, %v515_v43, 0.0  ;;  %v511_v52 = vsel %vm510_vm15, %v502_v34, %v506_v37 }
 0x1eb   : > { %v494_v48 = vmax.f32 %v457_v16, %v486_v45  ;;  %v392_v50 = vpop.permute.xlu1 %391  ;;  %v430_v51 = vpop.permute.xlu0 %429  ;;  %v417_v54 = vmax.f32 %v2974_v0, %v409_v44  ;;  %v470_v62 = vrot.slane %v460_v49, 7  ;;  %v507_v2 = vrot.slane %v460_v49, 1 }
 0x1ec   : > { %v532_v53 = vmax.f32 %v495_v46, %v524_v47  ;;  %v411_v55 = vsel %vm226_vm10, %v392_v50, 0.0  ;;  %v451_v57 = vsel %vm227_vm11, %v430_v51, 0.0 }
 0x1ed   : > { %v531_v56 = vmax.f32 %v494_v48, %v511_v52  ;;  %v419_v59 = vmax.f32 %v2990_v10, %v411_v55  ;;  %v459_v60 = vmax.f32 %v417_v54, %v451_v57 }
 0x1ee   : > { %v3188_v58 = vsub.f32 %v532_v53, %v2980_v6 }
 0x1ef   : > { %v3192_v61 = vsub.f32 %v531_v56, %v2972_v63  ;;  %v434_v3 = vpop.permute.xlu1 %433  ;;  %v394_v5 = vpop.permute.xlu0 %393  ;;  %v466_v8 = vrot.slane %v459_v60, 7  ;;  %v503_v9 = vrot.slane %v459_v60, 1 }
 0x1f0   : > { %v453_v12 = vsel %vm227_vm11, %v434_v3, 0.0  ;;  %v412_v13 = vsel %vm226_vm10, %v394_v5, 0.0  ;;  %1620 = vrot.lane.b32.xlu1 %v3188_v58, %s2760_s20 }
 0x1f1   : > { %2393 = vmatprep.mubr.msk.f32.mxu0 %vm229_vm0, %v3192_v61  ;;  %1617 = vrot.lane.b32.xlu0 %v3192_v61, %s2760_s20  ;;  %v475_v63 = vsel %vm473_vm14, %v466_v8, %v470_v62  ;;  %v479_v6 = vsel %vm473_vm14, %v470_v62, %v466_v8  ;;  %v516_v16 = vsel %vm510_vm15, %v507_v2, %v503_v9 }
 0x1f2   : > { %v461_v22 = vmax.f32 %v419_v59, %v453_v12  ;;  %2394 = vmatmul.mubr.msk.f32.vlgmr.msra.gmra.mrb[0].mxu0 %vm229_vm0, %v3188_v58  ;;  %v488_v27 = vsel %vm219_vm12, %v479_v6, 0.0  ;;  %v497_v29 = vmax.f32 %v460_v49, %v475_v63  ;;  %v526_v30 = vsel %vm222_vm13, %v516_v16, 0.0 }
 0x1f3   : > { %v420_v31 = vmax.f32 %v2992_v11, %v412_v13  ;;  %v398_v32 = vpop.permute.xlu1 %397  ;;  %v436_v33 = vpop.permute.xlu0 %435  ;;  %2458 = vmatpush3.bf16.msra.mxu0 %v2764_v28  ;;  %v496_v34 = vmax.f32 %v459_v60, %v488_v27  ;;  %v512_v37 = vsel %vm510_vm15, %v503_v9, %v507_v2 }
 0x1f4   : > { %v414_v35 = vsel %vm226_vm10, %v398_v32, 0.0  ;;  %v454_v36 = vsel %vm227_vm11, %v436_v33, 0.0  ;;  %v534_v38 = vmax.f32 %v497_v29, %v526_v30  ;;  %v467_v41 = vrot.slane %v461_v22, 7 }
 0x1f5   : > { %v462_v39 = vmax.f32 %v420_v31, %v454_v36  ;;  %v533_v40 = vmax.f32 %v496_v34, %v512_v37  ;;  %v422_v42 = vmax.f32 %v2998_v14, %v414_v35  ;;  %v504_v44 = vrot.slane %v461_v22, 1 }
 0x1f6   : > { %v3226_v43 = vsub.f32 %v534_v38, %v2982_v7 }
 0x1f7   : > { %v471_v45 = vrot.slane %v462_v39, 7  ;;  %v508_v46 = vrot.slane %v462_v39, 1  ;;  %v440_v47 = vpop.permute.xlu1 %439  ;;  %v396_v48 = vpop.permute.xlu0 %395  ;;  %v3229_v49 = vsub.f32 %v533_v40, %v2974_v0 }
 0x1f8   : > { %v456_v50 = vsel %vm227_vm11, %v440_v47, 0.0  ;;  %v413_v51 = vsel %vm226_vm10, %v396_v48, 0.0  ;;  %1626 = vrot.lane.b32.xlu1 %v3226_v43, %s2760_s20 }
 0x1f9   : > { %v476_v52 = vsel %vm473_vm14, %v467_v41, %v471_v45  ;;  %v480_v7 = vsel %vm473_vm14, %v471_v45, %v467_v41  ;;  %v517_v53 = vsel %vm510_vm15, %v508_v46, %v504_v44  ;;  %v464_v56 = vmax.f32 %v422_v42, %v456_v50  ;;  %2396 = vmatprep.mubr.msk.f32.mxu0 %vm229_vm0, %v3229_v49 }
 0x1fa   : > { %v490_v0 = vsel %vm219_vm12, %v480_v7, 0.0  ;;  %v499_v54 = vmax.f32 %v462_v39, %v476_v52  ;;  %v528_v55 = vsel %vm222_vm13, %v517_v53, 0.0  ;;  %1623 = vrot.lane.b32.xlu0 %v3229_v49, %s2760_s20  ;;  %v421_v59 = vmax.f32 %v3000_v15, %v413_v51  ;;  %2397 = vmatmul.mubr.msk.f32.gmra.mrb[2].mxu0 %vm229_vm0, %v3226_v43 }
 0x1fb   : > { %v498_v57 = vmax.f32 %v461_v22, %v490_v0  ;;  %v438_v60 = vpop.permute.xlu0 %437  ;;  %v2571_v62 = vpop.permute.xlu1 %2570  ;;  %v513_v2 = vsel %vm510_vm15, %v504_v44, %v508_v46  ;;  %v472_v63 = vrot.slane %v464_v56, 7  ;;  %v509_v16 = vrot.slane %v464_v56, 1 }
 0x1fc   : > { %v536_v3 = vmax.f32 %v499_v54, %v528_v55  ;;  %v455_v5 = vsel %vm227_vm11, %v438_v60, 0.0  ;;  %v2573_v12 = vunpack.i.h.bf16 %v2571_v62  ;;  %v2572_v30 = vunpack.i.l.bf16 %v2571_v62 }
 0x1fd   : > { %v535_v8 = vmax.f32 %v498_v57, %v513_v2  ;;  %v463_v9 = vmax.f32 %v421_v59, %v455_v5 }
 0x1fe   : > { %v3259_v13 = vsub.f32 %v536_v3, %v2992_v11  ;;  %v834_v35 = vsel %vm227_vm11, %v2573_v12, 0.0  ;;  %v833_v52 = vsel %vm227_vm11, %v2572_v30, 0.0 }
 0x1ff   : > { %v3262_v6 = vsub.f32 %v535_v8, %v2990_v10  ;;  %v468_v22 = vrot.slane %v463_v9, 7  ;;  %v505_v27 = vrot.slane %v463_v9, 1  ;;  %v2566_v29 = vpop.permute.xlu0 %2565  ;;  %v2581_v33 = vpop.permute.xlu1 %2580 }
 0x200   : > { %v2568_v31 = vunpack.i.h.bf16 %v2566_v29  ;;  %v2567_v32 = vunpack.i.l.bf16 %v2566_v29  ;;  %1632 = vrot.lane.b32.xlu1 %v3259_v13, %s2760_s20  ;;  %v2583_v44 = vunpack.i.h.bf16 %v2581_v33  ;;  %v2582_v55 = vunpack.i.l.bf16 %v2581_v33 }
 0x201   : > { %v477_v34 = vsel %vm473_vm14, %v468_v22, %v472_v63  ;;  %v481_v11 = vsel %vm473_vm14, %v472_v63, %v468_v22  ;;  %v518_v10 = vsel %vm510_vm15, %v509_v16, %v505_v27  ;;  %2399 = vmatprep.mubr.msk.f32.mxu0 %vm229_vm0, %v3262_v6  ;;  %1629 = vrot.lane.b32.xlu0 %v3262_v6, %s2760_s20 }
 0x202   : > { %v492_v36 = vsel %vm219_vm12, %v481_v11, 0.0  ;;  %v501_v37 = vmax.f32 %v464_v56, %v477_v34  ;;  %v530_v38 = vsel %vm222_vm13, %v518_v10, 0.0  ;;  %v794_v39 = vsel %vm226_vm10, %v2568_v31, 0.0  ;;  %2400 = vmatmul.mubr.msk.f32.gmra.mrb[4].mxu0 %vm229_vm0, %v3259_v13 }
 0x203   : > { %v500_v40 = vmax.f32 %v463_v9, %v492_v36  ;;  %v802_v41 = vmax.f32 %v3004_v18, %v794_v39  ;;  %v793_v42 = vsel %vm226_vm10, %v2567_v32, 0.0  ;;  %v2576_v45 = vpop.permute.xlu0 %2575  ;;  %v514_v46 = vsel %vm510_vm15, %v505_v27, %v509_v16  ;;  %v2591_v57 = vpop.permute.xlu1 %2590 }
 0x204   : > { %v538_v47 = vmax.f32 %v501_v37, %v530_v38  ;;  %v801_v48 = vmax.f32 %v3002_v17, %v793_v42  ;;  %v2578_v50 = vunpack.i.h.bf16 %v2576_v45  ;;  %v2577_v53 = vunpack.i.l.bf16 %v2576_v45 }
 0x205   : > { %v537_v51 = vmax.f32 %v500_v40, %v514_v46  ;;  %v842_v7 = vmax.f32 %v802_v41, %v834_v35  ;;  %v2593_v63 = vunpack.i.h.bf16 %v2591_v57  ;;  %v835_v30 = vsel %vm227_vm11, %v2582_v55, 0.0 }
 0x206   : > { %v3295_v0 = vsub.f32 %v538_v47, %v2998_v14  ;;  %v841_v54 = vmax.f32 %v801_v48, %v833_v52  ;;  %v796_v56 = vsel %vm226_vm10, %v2578_v50, 0.0  ;;  %v836_v14 = vsel %vm227_vm11, %v2583_v44, 0.0 }
 0x207   : > { %v3300_v59 = vsub.f32 %v537_v51, %v3000_v15  ;;  %v853_v60 = vrot.slane %v842_v7, 7  ;;  %v885_v62 = vrot.slane %v842_v7, 1  ;;  %v804_v2 = vmax.f32 %v3008_v20, %v796_v56  ;;  %v2586_v3 = vpop.permute.xlu0 %2585  ;;  %v2601_v50 = vpop.permute.xlu1 %2600 }
 0x208   : > { %v849_v5 = vrot.slane %v841_v54, 7  ;;  %v881_v8 = vrot.slane %v841_v54, 1  ;;  %v795_v9 = vsel %vm226_vm10, %v2577_v53, 0.0  ;;  %1638 = vrot.lane.b32.xlu1 %v3295_v0, %s2760_s20  ;;  %v2588_v16 = vunpack.i.h.bf16 %v2586_v3 }
 0x209   : > { %v844_v12 = vmax.f32 %v804_v2, %v836_v14  ;;  %v803_v15 = vmax.f32 %v3006_v19, %v795_v9  ;;  %2402 = vmatprep.mubr.msk.f32.mxu0 %vm229_vm0, %v3300_v59  ;;  %1635 = vrot.lane.b32.xlu0 %v3300_v59, %s2760_s20  ;;  %v2592_v34 = vunpack.i.l.bf16 %v2591_v57  ;;  %v2587_v40 = vunpack.i.l.bf16 %v2586_v3 }
 0x20a   : > { %v857_v22 = vsel %vm473_vm14, %v849_v5, %v853_v60  ;;  %v861_v27 = vsel %vm473_vm14, %v853_v60, %v849_v5  ;;  %v893_v29 = vsel %vm510_vm15, %v885_v62, %v881_v8  ;;  %2403 = vmatmul.mubr.msk.f32.gmra.mrb[6].mxu0 %vm229_vm0, %v3295_v0  ;;  %v889_v10 = vsel %vm510_vm15, %v881_v8, %v885_v62 }
 0x20b   : > { %v865_v31 = vsel %vm219_vm12, %v861_v27, 0.0  ;;  %v874_v32 = vmax.f32 %v842_v7, %v857_v22  ;;  %v898_v33 = vsel %vm222_vm13, %v893_v29, 0.0  ;;  %v854_v35 = vrot.slane %v844_v12, 7  ;;  %v2596_v53 = vpop.permute.xlu0 %2595 }
 0x20c   : > { %v873_v11 = vmax.f32 %v841_v54, %v865_v31  ;;  %v843_v36 = vmax.f32 %v803_v15, %v835_v30  ;;  %v886_v38 = vrot.slane %v844_v12, 1  ;;  %v798_v39 = vsel %vm226_vm10, %v2588_v16, 0.0 }
 0x20d   : > { %v906_v37 = vmax.f32 %v874_v32, %v898_v33  ;;  %v806_v45 = vmax.f32 %v3020_v24, %v798_v39  ;;  %v838_v47 = vsel %vm227_vm11, %v2593_v63, 0.0  ;;  %v797_v48 = vsel %vm226_vm10, %v2587_v40, 0.0 }
 0x20e   : > { %v905_v41 = vmax.f32 %v873_v11, %v889_v10  ;;  %v850_v42 = vrot.slane %v843_v36, 7  ;;  %v882_v44 = vrot.slane %v843_v36, 1  ;;  %v805_v62 = vmax.f32 %v3018_v23, %v797_v48 }
 0x20f   : > { %v3334_v46 = vsub.f32 %v906_v37, %v3004_v18  ;;  %v837_v18 = vsel %vm227_vm11, %v2592_v34, 0.0  ;;  %v846_v57 = vmax.f32 %v806_v45, %v838_v47  ;;  %v2603_v2 = vunpack.i.h.bf16 %v2601_v50 }
 0x210   : > { %v3341_v51 = vsub.f32 %v905_v41, %v3002_v17  ;;  %v858_v52 = vsel %vm473_vm14, %v850_v42, %v854_v35  ;;  %v862_v7 = vsel %vm473_vm14, %v854_v35, %v850_v42  ;;  %v894_v56 = vsel %vm510_vm15, %v886_v38, %v882_v44 }
 0x211   : > { %v867_v54 = vsel %vm219_vm12, %v862_v7, 0.0  ;;  %v876_v55 = vmax.f32 %v844_v12, %v858_v52  ;;  %1089 = vrot.lane.b32.xlu1 %v3334_v46, %s2760_s20  ;;  %v900_v60 = vsel %vm222_vm13, %v894_v56, 0.0  ;;  %v890_v3 = vsel %vm510_vm15, %v882_v44, %v886_v38 }
 0x212   : > { %v875_v17 = vmax.f32 %v843_v36, %v867_v54  ;;  %1086 = vrot.lane.b32.xlu0 %v3341_v51, %s2760_s20  ;;  %2409 = vmatprep.mubr.msk.f32.mxu1 %vm229_vm0, %v3341_v51  ;;  %v855_v8 = vrot.slane %v846_v57, 7  ;;  %v2598_v14 = vunpack.i.h.bf16 %v2596_v53  ;;  %v887_v12 = vrot.slane %v846_v57, 1 }
 0x213   : > { %v908_v5 = vmax.f32 %v876_v55, %v900_v60  ;;  %2410 = vmatmul.mubr.msk.f32.vlgmr.msra.gmra.mrb[0].mxu1 %vm229_vm0, %v3334_v46  ;;  %v845_v15 = vmax.f32 %v805_v62, %v837_v18  ;;  %v2597_v63 = vunpack.i.l.bf16 %v2596_v53  ;;  %v2602_v32 = vunpack.i.l.bf16 %v2601_v50 }
 0x214   : > { %v907_v9 = vmax.f32 %v875_v17, %v890_v3  ;;  %2460 = vmatpush3.bf16.msra.mxu1 %v2764_v28  ;;  %v800_v22 = vsel %vm226_vm10, %v2598_v14, 0.0  ;;  %v840_v34 = vsel %vm227_vm11, %v2603_v2, 0.0 }
 0x215   : > { %v3368_v16 = vsub.f32 %v908_v5, %v3008_v20  ;;  %v851_v29 = vrot.slane %v845_v15, 7  ;;  %v883_v30 = vrot.slane %v845_v15, 1  ;;  %v808_v31 = vmax.f32 %v3024_v26, %v800_v22 }
 0x216   : > { %v3373_v27 = vsub.f32 %v907_v9, %v3006_v19  ;;  %v799_v33 = vsel %vm226_vm10, %v2597_v63, 0.0  ;;  %v839_v41 = vsel %vm227_vm11, %v2602_v32, 0.0 }
 0x217   : > { %1095 = vrot.lane.b32.xlu1 %v3368_v16, %s2760_s20  ;;  %v859_v20 = vsel %vm473_vm14, %v851_v29, %v855_v8  ;;  %v863_v28 = vsel %vm473_vm14, %v855_v8, %v851_v29  ;;  %v895_v19 = vsel %vm510_vm15, %v887_v12, %v883_v30  ;;  %v848_v36 = vmax.f32 %v808_v31, %v840_v34 }
 0x218   : > { %1092 = vrot.lane.b32.xlu0 %v3373_v27, %s2760_s20  ;;  %v869_v11 = vsel %vm219_vm12, %v863_v28, 0.0  ;;  %v878_v10 = vmax.f32 %v846_v57, %v859_v20  ;;  %v902_v35 = vsel %vm222_vm13, %v895_v19, 0.0  ;;  %2412 = vmatprep.mubr.msk.f32.mxu1 %vm229_vm0, %v3373_v27  ;;  %v807_v38 = vmax.f32 %v3022_v25, %v799_v33 }
 0x219   : > { %v877_v37 = vmax.f32 %v845_v15, %v869_v11  ;;  %2413 = vmatmul.mubr.msk.f32.gmra.mrb[2].mxu1 %vm229_vm0, %v3368_v16  ;;  %v891_v39 = vsel %vm510_vm15, %v883_v30, %v887_v12  ;;  %v856_v44 = vrot.slane %v848_v36, 7  ;;  %v888_v45 = vrot.slane %v848_v36, 1 }
 0x21a   : > { %v910_v40 = vmax.f32 %v878_v10, %v902_v35  ;;  %v847_v47 = vmax.f32 %v807_v38, %v839_v41 }
 0x21b   : > { %v909_v42 = vmax.f32 %v877_v37, %v891_v39 }
 0x21c   : > { %v3404_v48 = vsub.f32 %v910_v40, %v3020_v24  ;;  %v852_v52 = vrot.slane %v847_v47, 7  ;;  %v884_v7 = vrot.slane %v847_v47, 1 }
 0x21d   : > { %v3407_v50 = vsub.f32 %v909_v42, %v3018_v23 }
 0x21e   : > { %1101 = vrot.lane.b32.xlu1 %v3404_v48, %s2760_s20  ;;  %v860_v18 = vsel %vm473_vm14, %v852_v52, %v856_v44  ;;  %v864_v53 = vsel %vm473_vm14, %v856_v44, %v852_v52  ;;  %v896_v54 = vsel %vm510_vm15, %v888_v45, %v884_v7  ;;  %v892_v57 = vsel %vm510_vm15, %v884_v7, %v888_v45 }
 0x21f   : > { %1098 = vrot.lane.b32.xlu0 %v3407_v50, %s2760_s20  ;;  %v871_v23 = vsel %vm219_vm12, %v864_v53, 0.0  ;;  %v880_v24 = vmax.f32 %v848_v36, %v860_v18  ;;  %v904_v55 = vsel %vm222_vm13, %v896_v54, 0.0  ;;  %2415 = vmatprep.mubr.msk.f32.mxu1 %vm229_vm0, %v3407_v50 }
 0x220   : > { %v879_v56 = vmax.f32 %v847_v47, %v871_v23  ;;  %2416 = vmatmul.mubr.msk.f32.gmra.mrb[4].mxu1 %vm229_vm0, %v3404_v48 }
 0x221   : > { %v912_v17 = vmax.f32 %v880_v24, %v904_v55 }
 0x222   : > { %v911_v60 = vmax.f32 %v879_v56, %v892_v57 }
 0x223   : > { %v3430_v62 = vsub.f32 %v912_v17, %v3024_v26 }
 0x224   : > { %v3433_v2 = vsub.f32 %v911_v60, %v3022_v25 }
 0x225   : > { %1107 = vrot.lane.b32.xlu1 %v3430_v62, %s2760_s20 }
 0x226   : > { %1104 = vrot.lane.b32.xlu0 %v3433_v2, %s2760_s20  ;;  %2418 = vmatprep.mubr.msk.f32.mxu1 %vm229_vm0, %v3433_v2 }
 0x227   : > { %2419 = vmatmul.mubr.msk.f32.gmra.mrb[6].mxu1 %vm229_vm0, %v3430_v62 }
 0x262   : > { %v1621_v3 = vpop.permute.xlu1 %1620 }
 0x263   : > { %v1618_v5 = vpop.permute.xlu0 %1617  ;;  %v1622_v37 = vsel %vm324_vm9, %v1621_v3, %v3188_v58 }
 0x264   : > { %v1619_v38 = vsel %vm324_vm9, %v1618_v5, %v3192_v61 }
 0x26a   : > { %v1627_v8 = vpop.permute.xlu1 %1626 }
 0x26b   : > { %v1628_v39 = vsel %vm324_vm9, %v1627_v8, %v3226_v43 }
 0x26c   : > { %v1624_v26 = vpop.permute.xlu0 %1623 }
 0x26d   : > { %v1625_v40 = vsel %vm324_vm9, %v1624_v26, %v3229_v49 }
 0x272   : > { %v1633_v14 = vpop.permute.xlu1 %1632 }
 0x273   : > { %v1630_v9 = vpop.permute.xlu0 %1629  ;;  %v1634_v41 = vsel %vm324_vm9, %v1633_v14, %v3259_v13 }
 0x274   : > { %v1631_v42 = vsel %vm324_vm9, %v1630_v9, %v3262_v6 }
 0x27a   : > { %v1639_v25 = vpop.permute.xlu1 %1638 }
 0x27b   : > { %v1636_v12 = vpop.permute.xlu0 %1635  ;;  %v1640_v44 = vsel %vm324_vm9, %v1639_v25, %v3295_v0 }
 0x27c   : > { %v1637_v45 = vsel %vm324_vm9, %v1636_v12, %v3300_v59 }
 0x283   : > { %v1090_v15 = vpop.permute.xlu1 %1089 }
 0x284   : > { %v1087_v63 = vpop.permute.xlu0 %1086  ;;  %v1091_v22 = vsel %vm324_vm9, %v1090_v15, %v3334_v46 }
 0x285   : > { %1112 = vrot.lane.b32.xlu1 %v1091_v22, %s2760_s20  ;;  %v1088_v29 = vsel %vm324_vm9, %v1087_v63, %v3341_v51 }
 0x286   : > { %1110 = vrot.lane.b32.xlu0 %v1088_v29, %s2760_s20 }
 0x289   : > { %v1096_v30 = vpop.permute.xlu1 %1095 }
 0x28a   : > { %v1093_v31 = vpop.permute.xlu0 %1092  ;;  %v1097_v32 = vsel %vm324_vm9, %v1096_v30, %v3368_v16 }
 0x28b   : > { %1116 = vrot.lane.b32.xlu1 %v1097_v32, %s2760_s20  ;;  %v1094_v33 = vsel %vm324_vm9, %v1093_v31, %v3373_v27 }
 0x28c   : > { %1114 = vrot.lane.b32.xlu0 %v1094_v33, %s2760_s20 }
 0x290   : > { %v1102_v20 = vpop.permute.xlu1 %1101 }
 0x291   : > { %v1099_v28 = vpop.permute.xlu0 %1098  ;;  %v1103_v19 = vsel %vm324_vm9, %v1102_v20, %v3404_v48 }
 0x292   : > { %1120 = vrot.lane.b32.xlu1 %v1103_v19, %s2760_s20  ;;  %v1100_v34 = vsel %vm324_vm9, %v1099_v28, %v3407_v50 }
 0x293   : > { %1118 = vrot.lane.b32.xlu0 %v1100_v34, %s2760_s20 }
 0x297   : > { %v1108_v11 = vpop.permute.xlu1 %1107 }
 0x298   : > { %v1105_v10 = vpop.permute.xlu0 %1104  ;;  %v1109_v35 = vsel %vm324_vm9, %v1108_v11, %v3430_v62 }
 0x299   : > { %1124 = vrot.lane.b32.xlu1 %v1109_v35, %s2760_s20  ;;  %v1106_v36 = vsel %vm324_vm9, %v1105_v10, %v3433_v2 }
 0x29a   : > { %1122 = vrot.lane.b32.xlu0 %v1106_v36, %s2760_s20 }
 0x29d   : > { %1643 = vrot.lane.b32.xlu1 %v1622_v37, %s2760_s20 }
 0x29e   : > { %1641 = vrot.lane.b32.xlu0 %v1619_v38, %s2760_s20 }
 0x2a1   : > { %1647 = vrot.lane.b32.xlu1 %v1628_v39, %s2760_s20 }
 0x2a2   : > { %1645 = vrot.lane.b32.xlu0 %v1625_v40, %s2760_s20 }
 0x2a5   : > { %1651 = vrot.lane.b32.xlu1 %v1634_v41, %s2760_s20 }
 0x2a6   : > { %1649 = vrot.lane.b32.xlu0 %v1631_v42, %s2760_s20 }
 0x2a9   : > { %1655 = vrot.lane.b32.xlu1 %v1640_v44, %s2760_s20 }
 0x2aa   : > { %1653 = vrot.lane.b32.xlu0 %v1637_v45, %s2760_s20  ;;  %s2690_s20 = scalar_lea.vmem %s2689_s27, 128 }
 0x2ab   : > { %p2692_p7 = scmp.lt.s32.totalorder %s2690_s20, %s2684_s23 }
 0x2ad   : > { %p2693_p9 = por %p2692_p7, %p2691_p5 }
 0x2af   : > { %p2694_p11 = pnand %p2693_p9, %p2687_p10 }
 0x2c5   : > { %v2395_v47 = vpop.f32.mrb[0].mxu0 }
 0x2c6   : > { %v678_v52 = vsel %vm676_vm1, %v2395_v47, 0.0  ;;  %v637_v7 = vpop.f32.mrb[1].mxu0 }
 0x2c7   : > { %v677_v18 = vsel %vm676_vm1, %v637_v7, 0.0 }
 0x2c8   : > { %v679_v53 = vadd.f32 %v678_v52, %v677_v18 }
 0x2ca   : > { %v680_v54 = vrot.slane %v679_v53, 4 }
 0x2cc   : > { %v681_v23 = vadd.f32 %v680_v54, %v679_v53 }
 0x2cd   : > { %v2398_v24 = vpop.f32.mrb[2].mxu0 }
 0x2ce   : > { %v687_v55 = vsel %vm676_vm1, %v2398_v24, 0.0  ;;  %v647_v56 = vpop.f32.mrb[3].mxu0  ;;  %v682_v17 = vrot.slane %v681_v23, 2 }
 0x2cf   : > { %v686_v57 = vsel %vm676_vm1, %v647_v56, 0.0 }
 0x2d0   : > { %v688_v60 = vadd.f32 %v687_v55, %v686_v57  ;;  %v683_v5 = vadd.f32 %v682_v17, %v681_v23 }
 0x2d2   : > { %v689_v3 = vrot.slane %v688_v60, 4  ;;  %v684_v63 = vrot.slane %v683_v5, 1 }
 0x2d4   : > { %v690_v8 = vadd.f32 %v689_v3, %v688_v60  ;;  %v685_v32 = vadd.f32 %v684_v63, %v683_v5 }
 0x2d5   : > { %v2401_v26 = vpop.f32.mrb[4].mxu0 }
 0x2d6   : > { %v696_v14 = vsel %vm676_vm1, %v2401_v26, 0.0  ;;  %v657_v9 = vpop.f32.mrb[5].mxu0  ;;  %v691_v25 = vrot.slane %v690_v8, 2 }
 0x2d7   : > { %v695_v12 = vsel %vm676_vm1, %v657_v9, 0.0 }
 0x2d8   : > { %v697_v15 = vadd.f32 %v696_v14, %v695_v12  ;;  %v692_v22 = vadd.f32 %v691_v25, %v690_v8 }
 0x2da   : > { %v698_v29 = vrot.slane %v697_v15, 4  ;;  %v693_v30 = vrot.slane %v692_v22, 1 }
 0x2dc   : > { %v699_v31 = vadd.f32 %v698_v29, %v697_v15  ;;  %v694_v33 = vadd.f32 %v693_v30, %v692_v22 }
 0x2dd   : > { %v2404_v20 = vpop.f32.mrb[6].mxu0 }
 0x2de   : > { %v700_v28 = vrot.slane %v699_v31, 2  ;;  %v705_v19 = vsel %vm676_vm1, %v2404_v20, 0.0  ;;  %v667_v34 = vpop.f32.mrb[7].mxu0  ;;  %v2149_v10 = vsel %vm2138_vm2, %v694_v33, %v685_v32 }
 0x2df   : > { %v704_v11 = vsel %vm676_vm1, %v667_v34, 0.0 }
 0x2e0   : > { %v701_v35 = vadd.f32 %v700_v28, %v699_v31  ;;  %v706_v36 = vadd.f32 %v705_v19, %v704_v11 }
 0x2e2   : > { %v702_v37 = vrot.slane %v701_v35, 1  ;;  %v707_v38 = vrot.slane %v706_v36, 4 }
 0x2e4   : > { %v703_v39 = vadd.f32 %v702_v37, %v701_v35  ;;  %v708_v40 = vadd.f32 %v707_v38, %v706_v36 }
 0x2e6   : > { %v709_v41 = vrot.slane %v708_v40, 2  ;;  %v2411_v42 = vpop.f32.mrb[0].mxu1  ;;  %v2150_v44 = vsel %vm2140_vm3, %v703_v39, %v2149_v10 }
 0x2e7   : > { %v1051_v45 = vsel %vm676_vm1, %v2411_v42, 0.0  ;;  %v1011_v47 = vpop.f32.mrb[1].mxu1 }
 0x2e8   : > { %v710_v52 = vadd.f32 %v709_v41, %v708_v40  ;;  %v1050_v7 = vsel %vm676_vm1, %v1011_v47, 0.0 }
 0x2e9   : > { %v1052_v18 = vadd.f32 %v1051_v45, %v1050_v7 }
 0x2ea   : > { %v711_v53 = vrot.slane %v710_v52, 1 }
 0x2eb   : > { %v1053_v54 = vrot.slane %v1052_v18, 4 }
 0x2ec   : > { %v712_v23 = vadd.f32 %v711_v53, %v710_v52  ;;  %v2414_v55 = vpop.f32.mrb[2].mxu1 }
 0x2ed   : > { %v1054_v24 = vadd.f32 %v1053_v54, %v1052_v18  ;;  %v1060_v56 = vsel %vm676_vm1, %v2414_v55, 0.0  ;;  %v1021_v57 = vpop.f32.mrb[3].mxu1 }
 0x2ee   : > { %v3505_v17 = vsel %vm4120_vm4, %v712_v23, %v2150_v44  ;;  %v1059_v60 = vsel %vm676_vm1, %v1021_v57, 0.0 }
 0x2ef   : > { %v1055_v3 = vrot.slane %v1054_v24, 2  ;;  %v1061_v5 = vadd.f32 %v1060_v56, %v1059_v60 }
 0x2f1   : > { %v1062_v8 = vrot.slane %v1061_v5, 4  ;;  %v1056_v26 = vadd.f32 %v1055_v3, %v1054_v24 }
 0x2f3   : > { %v1063_v14 = vadd.f32 %v1062_v8, %v1061_v5  ;;  %v2417_v9 = vpop.f32.mrb[4].mxu1  ;;  %v1057_v29 = vrot.slane %v1056_v26, 1 }
 0x2f4   : > { %v1069_v12 = vsel %vm676_vm1, %v2417_v9, 0.0  ;;  %v1031_v15 = vpop.f32.mrb[5].mxu1 }
 0x2f5   : > { %v1064_v25 = vrot.slane %v1063_v14, 2  ;;  %v1068_v63 = vsel %vm676_vm1, %v1031_v15, 0.0  ;;  %v1058_v34 = vadd.f32 %v1057_v29, %v1056_v26 }
 0x2f6   : > { %v1070_v31 = vadd.f32 %v1069_v12, %v1068_v63 }
 0x2f7   : > { %v1113_v22 = vpop.permute.xlu1 %1112  ;;  %v1065_v30 = vadd.f32 %v1064_v25, %v1063_v14 }
 0x2f8   : > { %v3512_v32 = vsel %vm324_vm9, %v1113_v22, %v3334_v46  ;;  %v1111_v33 = vpop.permute.xlu0 %1110  ;;  %v1071_v19 = vrot.slane %v1070_v31, 4 }
 0x2f9   : > { %v3516_v20 = vsel %vm324_vm9, %v1111_v33, %v3341_v51  ;;  %1146 = vrot.lane.b32.xlu1 %v3512_v32, %s2765_s17  ;;  %v1066_v28 = vrot.slane %v1065_v30, 1 }
 0x2fa   : > { %1144 = vrot.lane.b32.xlu0 %v3516_v20, %s2765_s17  ;;  %v1072_v10 = vadd.f32 %v1071_v19, %v1070_v31  ;;  %v2420_v35 = vpop.f32.mrb[6].mxu1 }
 0x2fb   : > { %v1067_v11 = vadd.f32 %v1066_v28, %v1065_v30  ;;  %v1078_v36 = vsel %vm676_vm1, %v2420_v35, 0.0  ;;  %v1041_v37 = vpop.f32.mrb[7].mxu1 }
 0x2fc   : > { %v1073_v38 = vrot.slane %v1072_v10, 2  ;;  %v1077_v39 = vsel %vm676_vm1, %v1041_v37, 0.0 }
 0x2fd   : > { %v2169_v40 = vsel %vm2138_vm2, %v1067_v11, %v1058_v34  ;;  %v1079_v41 = vadd.f32 %v1078_v36, %v1077_v39  ;;  %v3525_v45 = vpop.permute.xlu1 %1116 }
 0x2fe   : > { %v1074_v42 = vadd.f32 %v1073_v38, %v1072_v10  ;;  %v3527_v52 = vpop.permute.xlu0 %1114  ;;  %v1129_v11 = vsel %vm324_vm9, %v3525_v45, %v3368_v16 }
 0x2ff   : > { %v1080_v44 = vrot.slane %v1079_v41, 4  ;;  %v1128_v10 = vsel %vm324_vm9, %v3527_v52, %v3373_v27 }
 0x300   : > { %v1075_v47 = vrot.slane %v1074_v42, 1 }
 0x301   : > { %v1081_v7 = vadd.f32 %v1080_v44, %v1079_v41 }
 0x302   : > { %v1076_v18 = vadd.f32 %v1075_v47, %v1074_v42 }
 0x303   : > { %v1082_v53 = vrot.slane %v1081_v7, 2 }
 0x304   : > { %v2170_v54 = vsel %vm2140_vm3, %v1076_v18, %v2169_v40  ;;  %v3530_v24 = vpop.permute.xlu1 %1120 }
 0x305   : > { %v1083_v23 = vadd.f32 %v1082_v53, %v1081_v7  ;;  %v3532_v55 = vpop.permute.xlu0 %1118  ;;  %v1131_v35 = vsel %vm324_vm9, %v3530_v24, %v3404_v48 }
 0x306   : > { %v1130_v36 = vsel %vm324_vm9, %v3532_v55, %v3407_v50 }
 0x307   : > { %v1084_v56 = vrot.slane %v1083_v23, 1 }
 0x309   : > { %v1085_v57 = vadd.f32 %v1084_v56, %v1083_v23 }
 0x30b   : > { %v3534_v60 = vpop.permute.xlu1 %1124  ;;  %v3537_v3 = vsel %vm4120_vm4, %v1085_v57, %v2170_v54  ;;  %vm224_vm4 = vcmp.lt.s32.totalorder %v3154_v21, 14 }
 0x30c   : > { %v3539_v5 = vpop.permute.xlu0 %1122 }
 0x30f   : > { %v1644_v8 = vpop.permute.xlu1 %1643 }
 0x310   : > { %v1658_v26 = vsel %vm324_vm9, %v1644_v8, %v3188_v58  ;;  %v1642_v14 = vpop.permute.xlu0 %1641 }
 0x311   : > { %v1657_v9 = vsel %vm324_vm9, %v1642_v14, %v3192_v61  ;;  %1675 = vrot.lane.b32.xlu1 %v1658_v26, %s2765_s17 }
 0x312   : > { %1673 = vrot.lane.b32.xlu0 %v1657_v9, %s2765_s17 }
 0x313   : > { %v1648_v25 = vpop.permute.xlu1 %1647 }
 0x314   : > { %v1646_v12 = vpop.permute.xlu0 %1645  ;;  %v1660_v15 = vsel %vm324_vm9, %v1648_v25, %v3226_v43 }
 0x315   : > { %1715 = vrot.lane.b32.xlu1 %v1658_v26, %s2762_s5  ;;  %v1659_v63 = vsel %vm324_vm9, %v1646_v12, %v3229_v49 }
 0x316   : > { %1713 = vrot.lane.b32.xlu0 %v1657_v9, %s2762_s5 }
 0x317   : > { %v1652_v22 = vpop.permute.xlu1 %1651 }
 0x318   : > { %v1650_v29 = vpop.permute.xlu0 %1649  ;;  %v1662_v30 = vsel %vm324_vm9, %v1652_v22, %v3259_v13 }
 0x319   : > { %1679 = vrot.lane.b32.xlu1 %v1660_v15, %s2765_s17  ;;  %v1661_v31 = vsel %vm324_vm9, %v1650_v29, %v3262_v6 }
 0x31a   : > { %1677 = vrot.lane.b32.xlu0 %v1659_v63, %s2765_s17 }
 0x31b   : > { %v1656_v33 = vpop.permute.xlu1 %1655 }
 0x31c   : > { %v1654_v28 = vpop.permute.xlu0 %1653  ;;  %v1664_v19 = vsel %vm324_vm9, %v1656_v33, %v3295_v0 }
 0x31d   : > { %1755 = vrot.lane.b32.xlu1 %v1658_v26, %s2763_s8  ;;  %v1663_v34 = vsel %vm324_vm9, %v1654_v28, %v3300_v59 }
 0x31e   : > { %1753 = vrot.lane.b32.xlu0 %v1657_v9, %s2763_s8 }
 0x321   : > { %1719 = vrot.lane.b32.xlu1 %v1660_v15, %s2762_s5 }
 0x322   : > { %1717 = vrot.lane.b32.xlu0 %v1659_v63, %s2762_s5 }
 0x325   : > { %1795 = vrot.lane.b32.xlu1 %v1658_v26, %s2766_s28 }
 0x326   : > { %1793 = vrot.lane.b32.xlu0 %v1657_v9, %s2766_s28 }
 0x329   : > { %1683 = vrot.lane.b32.xlu1 %v1662_v30, %s2765_s17 }
 0x32a   : > { %1681 = vrot.lane.b32.xlu0 %v1661_v31, %s2765_s17 }
 0x32d   : > { %1759 = vrot.lane.b32.xlu1 %v1660_v15, %s2763_s8 }
 0x32e   : > { %1757 = vrot.lane.b32.xlu0 %v1659_v63, %s2763_s8 }
 0x331   : > { %1723 = vrot.lane.b32.xlu1 %v1662_v30, %s2762_s5 }
 0x332   : > { %1721 = vrot.lane.b32.xlu0 %v1661_v31, %s2762_s5 }
 0x335   : > { %1799 = vrot.lane.b32.xlu1 %v1660_v15, %s2766_s28 }
 0x336   : > { %1797 = vrot.lane.b32.xlu0 %v1659_v63, %s2766_s28 }
 0x339   : > { %1687 = vrot.lane.b32.xlu1 %v1664_v19, %s2765_s17 }
 0x33a   : > { %1685 = vrot.lane.b32.xlu0 %v1663_v34, %s2765_s17 }
 0x33d   : > { %1763 = vrot.lane.b32.xlu1 %v1662_v30, %s2763_s8 }
 0x33e   : > { %1761 = vrot.lane.b32.xlu0 %v1661_v31, %s2763_s8 }
 0x341   : > { %1727 = vrot.lane.b32.xlu1 %v1664_v19, %s2762_s5 }
 0x342   : > { %1725 = vrot.lane.b32.xlu0 %v1663_v34, %s2762_s5 }
 0x345   : > { %1803 = vrot.lane.b32.xlu1 %v1662_v30, %s2766_s28 }
 0x346   : > { %1801 = vrot.lane.b32.xlu0 %v1661_v31, %s2766_s28 }
 0x349   : > { %1767 = vrot.lane.b32.xlu1 %v1664_v19, %s2763_s8 }
 0x34a   : > { %1765 = vrot.lane.b32.xlu0 %v1663_v34, %s2763_s8 }
 0x34d   : > { %1807 = vrot.lane.b32.xlu1 %v1664_v19, %s2766_s28 }
 0x34e   : > { %1805 = vrot.lane.b32.xlu0 %v1663_v34, %s2766_s28 }
 0x351   : > { %1186 = vrot.lane.b32.xlu1 %v3512_v32, %s2762_s5 }
 0x352   : > { %1184 = vrot.lane.b32.xlu0 %v3516_v20, %s2762_s5 }
 0x355   : > { %1150 = vrot.lane.b32.xlu1 %v1129_v11, %s2765_s17 }
 0x356   : > { %1148 = vrot.lane.b32.xlu0 %v1128_v10, %s2765_s17 }
 0x359   : > { %1226 = vrot.lane.b32.xlu1 %v3512_v32, %s2763_s8 }
 0x35a   : > { %1224 = vrot.lane.b32.xlu0 %v3516_v20, %s2763_s8 }
 0x35d   : > { %1190 = vrot.lane.b32.xlu1 %v1129_v11, %s2762_s5 }
 0x35e   : > { %1188 = vrot.lane.b32.xlu0 %v1128_v10, %s2762_s5 }
 0x361   : > { %1268 = vrot.lane.b32.xlu1 %v3512_v32, %s2766_s28  ;;  %v1133_v32 = vsel %vm324_vm9, %v3534_v60, %v3430_v62 }
 0x362   : > { %1266 = vrot.lane.b32.xlu0 %v3516_v20, %s2766_s28  ;;  %v1132_v20 = vsel %vm324_vm9, %v3539_v5, %v3433_v2  ;;  %vm1415_vm9 = vcmp.lt.s32.totalorder %v3146_v4, 6 }
 0x365   : > { %1154 = vrot.lane.b32.xlu1 %v1131_v35, %s2765_s17 }
 0x366   : > { %1152 = vrot.lane.b32.xlu0 %v1130_v36, %s2765_s17 }
 0x369   : > { %1230 = vrot.lane.b32.xlu1 %v1129_v11, %s2763_s8 }
 0x36a   : > { %1228 = vrot.lane.b32.xlu0 %v1128_v10, %s2763_s8 }
 0x36b   : > { %v3637_v37 = vpop.permute.xlu1 %1146 }
 0x36c   : > { %v3639_v38 = vpop.permute.xlu0 %1144 }
 0x36d   : > { %1194 = vrot.lane.b32.xlu1 %v1131_v35, %s2762_s5 }
 0x36e   : > { %1192 = vrot.lane.b32.xlu0 %v1130_v36, %s2762_s5 }
 0x371   : > { %1272 = vrot.lane.b32.xlu1 %v1129_v11, %s2766_s28 }
 0x372   : > { %1270 = vrot.lane.b32.xlu0 %v1128_v10, %s2766_s28 }
 0x375   : > { %1158 = vrot.lane.b32.xlu1 %v1133_v32, %s2765_s17 }
 0x376   : > { %1156 = vrot.lane.b32.xlu0 %v1132_v20, %s2765_s17 }
 0x379   : > { %1234 = vrot.lane.b32.xlu1 %v1131_v35, %s2763_s8 }
 0x37a   : > { %1232 = vrot.lane.b32.xlu0 %v1130_v36, %s2763_s8 }
 0x37d   : > { %1198 = vrot.lane.b32.xlu1 %v1133_v32, %s2762_s5 }
 0x37e   : > { %1196 = vrot.lane.b32.xlu0 %v1132_v20, %s2762_s5 }
 0x381   : > { %1276 = vrot.lane.b32.xlu1 %v1131_v35, %s2766_s28 }
 0x382   : > { %1274 = vrot.lane.b32.xlu0 %v1130_v36, %s2766_s28 }
 0x383   : > { %v1676_v39 = vpop.permute.xlu1 %1675 }
 0x384   : > { %v1674_v40 = vpop.permute.xlu0 %1673  ;;  %v1698_v52 = vsel %vm225_vm5, %v1676_v39, 0.0 }
 0x385   : > { %1238 = vrot.lane.b32.xlu1 %v1133_v32, %s2763_s8  ;;  %v1697_v18 = vsel %vm225_vm5, %v1674_v40, 0.0  ;;  %v1706_v54 = vmax.f32 %v3188_v58, %v1698_v52 }
 0x386   : > { %1236 = vrot.lane.b32.xlu0 %v1132_v20, %s2763_s8  ;;  %v1705_v24 = vmax.f32 %v3192_v61, %v1697_v18 }
 0x387   : > { %v1716_v41 = vpop.permute.xlu1 %1715 }
 0x388   : > { %v1714_v42 = vpop.permute.xlu0 %1713  ;;  %v1738_v53 = vsel %vm226_vm10, %v1716_v41, 0.0 }
 0x389   : > { %1280 = vrot.lane.b32.xlu1 %v1133_v32, %s2766_s28  ;;  %v1746_v57 = vmax.f32 %v1706_v54, %v1738_v53 }
 0x38a   : > { %1278 = vrot.lane.b32.xlu0 %v1132_v20, %s2766_s28 }
 0x38b   : > { %v1680_v44 = vpop.permute.xlu1 %1679 }
 0x38c   : > { %v1678_v45 = vpop.permute.xlu0 %1677  ;;  %v1700_v40 = vsel %vm225_vm5, %v1680_v44, 0.0 }
 0x38d   : > { %v1699_v52 = vsel %vm225_vm5, %v1678_v45, 0.0  ;;  %v1708_v45 = vmax.f32 %v3226_v43, %v1700_v40 }
 0x38e   : > { %2152 = vrot.lane.b32.xlu0 %v3505_v17, %s2767_s24  ;;  %v1737_v17 = vsel %vm226_vm10, %v1714_v42, 0.0 }
 0x38f   : > { %v1756_v47 = vpop.permute.xlu1 %1755  ;;  %v1745_v5 = vmax.f32 %v1705_v24, %v1737_v17 }
 0x390   : > { %v1754_v7 = vpop.permute.xlu0 %1753  ;;  %v1778_v55 = vsel %vm227_vm11, %v1756_v47, 0.0 }
 0x391   : > { %v1777_v60 = vsel %vm227_vm11, %v1754_v7, 0.0 }
 0x392   : > { %2172 = vrot.lane.b32.xlu0 %v3537_v3, %s2768_s25  ;;  %v1786_v3 = vmax.f32 %v1746_v57, %v1778_v55  ;;  %v1785_v26 = vmax.f32 %v1745_v5, %v1777_v60  ;;  %v1707_v5 = vmax.f32 %v3229_v49, %v1699_v52 }
 0x393   : > { %v1720_v23 = vpop.permute.xlu1 %1719 }
 0x394   : > { %v1718_v56 = vpop.permute.xlu0 %1717  ;;  %v1740_v53 = vsel %vm226_vm10, %v1720_v23, 0.0 }
 0x395   : > { %v1739_v24 = vsel %vm226_vm10, %v1718_v56, 0.0 }
 0x397   : > { %v1796_v8 = vpop.permute.xlu1 %1795 }
 0x398   : > { %v1818_v14 = vsel %vm228_vm6, %v1796_v8, 0.0  ;;  %v1794_v9 = vpop.permute.xlu0 %1793 }
 0x399   : > { %v1826_v25 = vmax.f32 %v1786_v3, %v1818_v14  ;;  %v1817_v12 = vsel %vm228_vm6, %v1794_v9, 0.0 }
 0x39a   : > { %v1825_v15 = vmax.f32 %v1785_v26, %v1817_v12  ;;  %v1748_v26 = vmax.f32 %v1708_v45, %v1740_v53 }
 0x39b   : > { %v1837_v63 = vrot.slane %v1826_v25, 6  ;;  %v1901_v22 = vrot.slane %v1826_v25, 1  ;;  %v3671_v29 = vpop.permute.xlu1 %1683  ;;  %v1869_v30 = vrot.slane %v1826_v25, 7  ;;  %v1933_v34 = vrot.slane %v1826_v25, 2 }
 0x39c   : > { %v1833_v31 = vrot.slane %v1825_v15, 6  ;;  %v1865_v33 = vrot.slane %v1825_v15, 7  ;;  %v1897_v28 = vrot.slane %v1825_v15, 1  ;;  %v3673_v19 = vpop.permute.xlu0 %1681  ;;  %v1929_v35 = vrot.slane %v1825_v15, 2 }
 0x39d   : > { %v1702_v53 = vsel %vm225_vm5, %v3671_v29, 0.0 }
 0x39e   : > { %v1841_v11 = vsel %vm1314_vm8, %v1833_v31, %v1837_v63  ;;  %v1845_v10 = vsel %vm1314_vm8, %v1837_v63, %v1833_v31  ;;  %v1909_v20 = vsel %vm510_vm15, %v1901_v22, %v1897_v28  ;;  %v1873_v42 = vsel %vm473_vm14, %v1865_v33, %v1869_v30 }
 0x39f   : > { %v1849_v36 = vsel %vm217_vm7, %v1845_v10, 0.0  ;;  %v1858_v32 = vmax.f32 %v1826_v25, %v1841_v11  ;;  %v1760_v39 = vpop.permute.xlu1 %1759  ;;  %v1877_v18 = vsel %vm473_vm14, %v1869_v30, %v1865_v33  ;;  %v1914_v44 = vsel %vm222_vm13, %v1909_v20, 0.0 }
 0x3a0   : > { %v1857_v41 = vmax.f32 %v1825_v15, %v1849_v36  ;;  %v1758_v47 = vpop.permute.xlu0 %1757  ;;  %v1941_v54 = vsel %vm1415_vm9, %v1933_v34, %v1929_v35  ;;  %v1881_v17 = vsel %vm219_vm12, %v1877_v18, 0.0  ;;  %v1780_v23 = vsel %vm227_vm11, %v1760_v39, 0.0 }
 0x3a1   : > { %v1890_v7 = vmax.f32 %v1858_v32, %v1873_v42  ;;  %v1905_v8 = vsel %vm510_vm15, %v1897_v28, %v1901_v22  ;;  %v1946_v14 = vsel %vm224_vm4, %v1941_v54, 0.0  ;;  %v1779_v9 = vsel %vm227_vm11, %v1758_v47, 0.0 }
 0x3a2   : > { %v1889_v60 = vmax.f32 %v1857_v41, %v1881_v17  ;;  %v1747_v25 = vmax.f32 %v1707_v5, %v1739_v24  ;;  %v1937_v12 = vsel %vm1415_vm9, %v1929_v35, %v1933_v34  ;;  %v1788_v63 = vmax.f32 %v1748_v26, %v1780_v23 }
 0x3a3   : > { %v1922_v55 = vmax.f32 %v1890_v7, %v1914_v44  ;;  %v1724_v57 = vpop.permute.xlu1 %1723  ;;  %v1701_v5 = vsel %vm225_vm5, %v3673_v19, 0.0  ;;  %v1710_v26 = vmax.f32 %v3259_v13, %v1702_v53 }
 0x3a4   : > { %v1722_v3 = vpop.permute.xlu0 %1721  ;;  %v1921_v56 = vmax.f32 %v1889_v60, %v1905_v8  ;;  %v1787_v33 = vmax.f32 %v1747_v25, %v1779_v9 }
 0x3a5   : > { %v1954_v15 = vmax.f32 %v1922_v55, %v1946_v14  ;;  %v1742_v14 = vsel %vm226_vm10, %v1724_v57, 0.0  ;;  %v1741_v25 = vsel %vm226_vm10, %v1722_v3, 0.0 }
 0x3a6   : > { %v1953_v31 = vmax.f32 %v1921_v56, %v1937_v12 }
 0x3a7   : > { %v1800_v30 = vpop.permute.xlu1 %1799  ;;  %v1962_v20 = vmul.f32 %v1954_v15, %v3334_v46 }
 0x3a8   : > { %v1820_v22 = vsel %vm228_vm6, %v1800_v30, 0.0  ;;  %v1798_v28 = vpop.permute.xlu0 %1797  ;;  %v1961_v36 = vmul.f32 %v1953_v31, %v3341_v51  ;;  %v1709_v30 = vmax.f32 %v3262_v6, %v1701_v5 }
 0x3a9   : > { %v1828_v11 = vmax.f32 %v1788_v63, %v1820_v22  ;;  %v1819_v10 = vsel %vm228_vm6, %v1798_v28, 0.0  ;;  %v1750_v28 = vmax.f32 %v1710_v26, %v1742_v14 }
 0x3aa   : > { %v1827_v32 = vmax.f32 %v1787_v33, %v1819_v10  ;;  %2441 = vmatprep.mubr.msk.f32.mxu1 %vm229_vm0, %v1961_v36  ;;  %v1749_v36 = vmax.f32 %v1709_v30, %v1741_v25 }
 0x3ab   : > { %v1838_v39 = vrot.slane %v1828_v11, 6  ;;  %v1870_v34 = vrot.slane %v1828_v11, 7  ;;  %v1688_v35 = vpop.permute.xlu1 %1687  ;;  %2442 = vmatmul.mubr.msk.f32.vlgmr.msra.gmra.mrb[8].mxu1 %vm229_vm0, %v1962_v20  ;;  %v1902_v47 = vrot.slane %v1828_v11, 1  ;;  %v1934_v44 = vrot.slane %v1828_v11, 2 }
 0x3ac   : > { %v1834_v40 = vrot.slane %v1827_v32, 6  ;;  %v1866_v41 = vrot.slane %v1827_v32, 7  ;;  %v1686_v42 = vpop.permute.xlu0 %1685  ;;  %v1898_v52 = vrot.slane %v1827_v32, 1  ;;  %v1930_v17 = vrot.slane %v1827_v32, 2 }
 0x3ae   : > { %v1846_v7 = vsel %vm1314_vm8, %v1838_v39, %v1834_v40  ;;  %v1878_v18 = vsel %vm473_vm14, %v1870_v34, %v1866_v41  ;;  %v1842_v60 = vsel %vm1314_vm8, %v1834_v40, %v1838_v39  ;;  %v1910_v29 = vsel %vm510_vm15, %v1902_v47, %v1898_v52 }
 0x3af   : > { %v1851_v54 = vsel %vm217_vm7, %v1846_v7, 0.0  ;;  %v1764_v45 = vpop.permute.xlu1 %1763  ;;  %v1883_v23 = vsel %vm219_vm12, %v1878_v18, 0.0  ;;  %v1860_v8 = vmax.f32 %v1828_v11, %v1842_v60  ;;  %v1874_v56 = vsel %vm473_vm14, %v1866_v41, %v1870_v34 }
 0x3b0   : > { %v1859_v24 = vmax.f32 %v1827_v32, %v1851_v54  ;;  %v1762_v55 = vpop.permute.xlu0 %1761  ;;  %v1906_v12 = vsel %vm510_vm15, %v1898_v52, %v1902_v47  ;;  %v1942_v63 = vsel %vm1415_vm9, %v1934_v44, %v1930_v17  ;;  %v1782_v57 = vsel %vm227_vm11, %v1764_v45, 0.0 }
 0x3b1   : > { %v1892_v15 = vmax.f32 %v1860_v8, %v1874_v56  ;;  %v1916_v22 = vsel %vm222_vm13, %v1910_v29, 0.0  ;;  %v1781_v3 = vsel %vm227_vm11, %v1762_v55, 0.0  ;;  %v1938_v11 = vsel %vm1415_vm9, %v1930_v17, %v1934_v44 }
 0x3b2   : > { %v1891_v9 = vmax.f32 %v1859_v24, %v1883_v23  ;;  %v1948_v20 = vsel %vm224_vm4, %v1942_v63, 0.0  ;;  %v1704_v39 = vsel %vm225_vm5, %v1688_v35, 0.0  ;;  %v1790_v34 = vmax.f32 %v1750_v28, %v1782_v57 }
 0x3b3   : > { %v1728_v19 = vpop.permute.xlu1 %1727  ;;  %v1924_v10 = vmax.f32 %v1892_v15, %v1916_v22  ;;  %v1703_v47 = vsel %vm225_vm5, %v1686_v42, 0.0  ;;  %v1789_v52 = vmax.f32 %v1749_v36, %v1781_v3  ;;  %v1712_v24 = vmax.f32 %v3295_v0, %v1704_v39 }
 0x3b4   : > { %v1726_v31 = vpop.permute.xlu0 %1725  ;;  %v1923_v33 = vmax.f32 %v1891_v9, %v1906_v12  ;;  %v1744_v35 = vsel %vm226_vm10, %v1728_v19, 0.0  ;;  %v1711_v55 = vmax.f32 %v3300_v59, %v1703_v47 }
 0x3b5   : > { %v1956_v41 = vmax.f32 %v1924_v10, %v1948_v20  ;;  %v1743_v45 = vsel %vm226_vm10, %v1726_v31, 0.0  ;;  %v1752_v14 = vmax.f32 %v1712_v24, %v1744_v35 }
 0x3b6   : > { %v1955_v32 = vmax.f32 %v1923_v33, %v1938_v11  ;;  %v1751_v9 = vmax.f32 %v1711_v55, %v1743_v45 }
 0x3b7   : > { %v1804_v40 = vpop.permute.xlu1 %1803  ;;  %v1964_v17 = vmul.f32 %v1956_v41, %v3368_v16 }
 0x3b8   : > { %v1822_v7 = vsel %vm228_vm6, %v1804_v40, 0.0  ;;  %v1802_v18 = vpop.permute.xlu0 %1801  ;;  %v1963_v53 = vmul.f32 %v1955_v32, %v3373_v27 }
 0x3b9   : > { %v1830_v44 = vmax.f32 %v1790_v34, %v1822_v7  ;;  %v1821_v54 = vsel %vm228_vm6, %v1802_v18, 0.0 }
 0x3ba   : > { %v1829_v42 = vmax.f32 %v1789_v52, %v1821_v54  ;;  %2444 = vmatprep.mubr.msk.f32.mxu1 %vm229_vm0, %v1963_v53 }
 0x3bb   : > { %v1839_v60 = vrot.slane %v1830_v44, 6  ;;  %v1871_v5 = vrot.slane %v1830_v44, 7  ;;  %v1768_v23 = vpop.permute.xlu1 %1767  ;;  %2445 = vmatmul.mubr.msk.f32.gmra.mrb[10].mxu1 %vm229_vm0, %v1964_v17  ;;  %v1903_v19 = vrot.slane %v1830_v44, 1  ;;  %v1935_v12 = vrot.slane %v1830_v44, 2 }
 0x3bc   : > { %v1835_v8 = vrot.slane %v1829_v42, 6  ;;  %v1867_v29 = vrot.slane %v1829_v42, 7  ;;  %v1766_v26 = vpop.permute.xlu0 %1765  ;;  %v1784_v56 = vsel %vm227_vm11, %v1768_v23, 0.0  ;;  %v1899_v57 = vrot.slane %v1829_v42, 1 }
 0x3bd   : > { %v1783_v25 = vsel %vm227_vm11, %v1766_v26, 0.0  ;;  %v1931_v31 = vrot.slane %v1829_v42, 2  ;;  %v1792_v33 = vmax.f32 %v1752_v14, %v1784_v56 }
 0x3be   : > { %v1847_v15 = vsel %vm1314_vm8, %v1839_v60, %v1835_v8  ;;  %v1879_v63 = vsel %vm473_vm14, %v1871_v5, %v1867_v29  ;;  %v1791_v3 = vmax.f32 %v1751_v9, %v1783_v25  ;;  %v1843_v36 = vsel %vm1314_vm8, %v1835_v8, %v1839_v60 }
 0x3bf   : > { %v1853_v30 = vsel %vm217_vm7, %v1847_v15, 0.0  ;;  %v1808_v22 = vpop.permute.xlu1 %1807  ;;  %v1885_v39 = vsel %vm219_vm12, %v1879_v63, 0.0  ;;  %v1862_v34 = vmax.f32 %v1830_v44, %v1843_v36  ;;  %v1911_v18 = vsel %vm510_vm15, %v1903_v19, %v1899_v57 }
 0x3c0   : > { %v1861_v28 = vmax.f32 %v1829_v42, %v1853_v30  ;;  %v1824_v11 = vsel %vm228_vm6, %v1808_v22, 0.0  ;;  %v1806_v10 = vpop.permute.xlu0 %1805  ;;  %v1907_v35 = vsel %vm510_vm15, %v1899_v57, %v1903_v19  ;;  %v1875_v45 = vsel %vm473_vm14, %v1867_v29, %v1871_v5 }
 0x3c1   : > { %v1832_v32 = vmax.f32 %v1792_v33, %v1824_v11  ;;  %v1823_v20 = vsel %vm228_vm6, %v1806_v10, 0.0  ;;  %v1939_v44 = vsel %vm1415_vm9, %v1931_v31, %v1935_v12  ;;  %v1894_v24 = vmax.f32 %v1862_v34, %v1875_v45 }
 0x3c2   : > { %v1831_v40 = vmax.f32 %v1791_v3, %v1823_v20  ;;  %v1893_v41 = vmax.f32 %v1861_v28, %v1885_v39  ;;  %v1943_v55 = vsel %vm1415_vm9, %v1935_v12, %v1931_v31  ;;  %v1918_v26 = vsel %vm222_vm13, %v1911_v18, 0.0 }
 0x3c3   : > { %v1840_v47 = vrot.slane %v1832_v32, 6  ;;  %v1872_v52 = vrot.slane %v1832_v32, 7  ;;  %v1187_v7 = vpop.permute.xlu1 %1186  ;;  %v1904_v60 = vrot.slane %v1832_v32, 1  ;;  %v1926_v9 = vmax.f32 %v1894_v24, %v1918_v26 }
 0x3c4   : > { %v1836_v53 = vrot.slane %v1831_v40, 6  ;;  %v1868_v54 = vrot.slane %v1831_v40, 7  ;;  %v1185_v17 = vpop.permute.xlu0 %1184  ;;  %v1925_v42 = vmax.f32 %v1893_v41, %v1907_v35  ;;  %v1900_v8 = vrot.slane %v1831_v40, 1 }
 0x3c5   : > { %v1936_v25 = vrot.slane %v1832_v32, 2  ;;  %v1950_v15 = vsel %vm224_vm4, %v1943_v55, 0.0  ;;  %v1932_v63 = vrot.slane %v1831_v40, 2  ;;  %v1169_v20 = vsel %vm225_vm5, %v3637_v37, 0.0 }
 0x3c6   : > { %v1848_v23 = vsel %vm1314_vm8, %v1840_v47, %v1836_v53  ;;  %v1957_v29 = vmax.f32 %v1925_v42, %v1939_v44  ;;  %v1880_v56 = vsel %vm473_vm14, %v1872_v52, %v1868_v54  ;;  %v1958_v57 = vmax.f32 %v1926_v9, %v1950_v15 }
 0x3c7   : > { %v1855_v14 = vsel %vm217_vm7, %v1848_v23, 0.0  ;;  %v3815_v5 = vpop.permute.xlu1 %1150  ;;  %v1887_v31 = vsel %vm219_vm12, %v1880_v56, 0.0  ;;  %v1844_v22 = vsel %vm1314_vm8, %v1836_v53, %v1840_v47  ;;  %v1908_v11 = vsel %vm510_vm15, %v1900_v8, %v1904_v60 }
 0x3c8   : > { %v1863_v19 = vmax.f32 %v1831_v40, %v1855_v14  ;;  %v3819_v12 = vpop.permute.xlu0 %1148  ;;  %v1965_v30 = vmul.f32 %v1957_v29, %v3407_v50  ;;  %v1966_v3 = vmul.f32 %v1958_v57, %v3404_v48  ;;  %v1864_v10 = vmax.f32 %v1832_v32, %v1844_v22 }
 0x3c9   : > { %v1912_v36 = vsel %vm510_vm15, %v1904_v60, %v1900_v8  ;;  %v1876_v40 = vsel %vm473_vm14, %v1868_v54, %v1872_v52  ;;  %v1168_v41 = vsel %vm225_vm5, %v3639_v38, 0.0  ;;  %v1940_v32 = vsel %vm1415_vm9, %v1932_v63, %v1936_v25 }
 0x3ca   : > { %v1895_v33 = vmax.f32 %v1863_v19, %v1887_v31  ;;  %2447 = vmatprep.mubr.msk.f32.mxu1 %vm229_vm0, %v1965_v30  ;;  %v1896_v47 = vmax.f32 %v1864_v10, %v1876_v40  ;;  %v1944_v18 = vsel %vm1415_vm9, %v1936_v25, %v1932_v63  ;;  %v1209_v37 = vsel %vm226_vm10, %v1187_v7, 0.0 }
 0x3cb   : > { %v1227_v28 = vpop.permute.xlu1 %1226  ;;  %2448 = vmatmul.mubr.msk.f32.gmra.mrb[12].mxu1 %vm229_vm0, %v1966_v3  ;;  %v1920_v52 = vsel %vm222_vm13, %v1912_v36, 0.0  ;;  %v1177_v54 = vmax.f32 %v3334_v46, %v1169_v20  ;;  %v1208_v38 = vsel %vm226_vm10, %v1185_v17, 0.0  ;;  %v1176_v42 = vmax.f32 %v3341_v51, %v1168_v41 }
 0x3cc   : > { %v1225_v39 = vpop.permute.xlu0 %1224  ;;  %v1927_v34 = vmax.f32 %v1895_v33, %v1908_v11  ;;  %v1928_v45 = vmax.f32 %v1896_v47, %v1920_v52  ;;  %v1249_v44 = vsel %vm227_vm11, %v1227_v28, 0.0  ;;  %v1952_v7 = vsel %vm224_vm4, %v1944_v18, 0.0 }
 0x3cd   : > { %v1217_v60 = vmax.f32 %v1177_v54, %v1209_v37  ;;  %v1248_v46 = vsel %vm227_vm11, %v1225_v39, 0.0  ;;  %v1216_v8 = vmax.f32 %v1176_v42, %v1208_v38  ;;  %v1171_v10 = vsel %vm225_vm5, %v3815_v5, 0.0 }
 0x3ce   : > { %v1959_v53 = vmax.f32 %v1927_v34, %v1940_v32  ;;  %v1960_v23 = vmax.f32 %v1928_v45, %v1952_v7  ;;  %v1179_v37 = vmax.f32 %v3368_v16, %v1171_v10 }
 0x3cf   : > { %v1191_v35 = vpop.permute.xlu1 %1190  ;;  %v1257_v17 = vmax.f32 %v1217_v60, %v1249_v44  ;;  %v1256_v14 = vmax.f32 %v1216_v8, %v1248_v46 }
 0x3d0   : > { %v1189_v24 = vpop.permute.xlu0 %1188  ;;  %v1967_v55 = vmul.f32 %v1959_v53, %v3433_v2  ;;  %v1968_v51 = vmul.f32 %v1960_v23, %v3430_v62  ;;  %v1170_v53 = vsel %vm225_vm5, %v3819_v12, 0.0  ;;  %v1211_v38 = vsel %vm226_vm10, %v1191_v35, 0.0 }
 0x3d1   : > { %v1210_v44 = vsel %vm226_vm10, %v1189_v24, 0.0  ;;  %v1178_v35 = vmax.f32 %v3373_v27, %v1170_v53 }
 0x3d2   : > { %2450 = vmatprep.mubr.msk.f32.mxu1 %vm229_vm0, %v1967_v55 }
 0x3d3   : > { %v1269_v26 = vpop.permute.xlu1 %1268  ;;  %2451 = vmatmul.mubr.msk.f32.gmra.mrb[14].mxu1 %vm229_vm0, %v1968_v51 }
 0x3d4   : > { %v1291_v29 = vsel %vm228_vm6, %v1269_v26, 0.0  ;;  %v1267_v9 = vpop.permute.xlu0 %1266 }
 0x3d5   : > { %v1299_v56 = vmax.f32 %v1257_v17, %v1291_v29  ;;  %v1290_v25 = vsel %vm228_vm6, %v1267_v9, 0.0  ;;  %v1219_v17 = vmax.f32 %v1179_v37, %v1211_v38 }
 0x3d6   : > { %v1298_v19 = vmax.f32 %v1256_v14, %v1290_v25  ;;  %v1218_v14 = vmax.f32 %v1178_v35, %v1210_v44 }
 0x3d7   : > { %v1310_v15 = vrot.slane %v1299_v56, 6  ;;  %v1347_v63 = vrot.slane %v1299_v56, 7  ;;  %v1379_v30 = vrot.slane %v1299_v56, 1  ;;  %v1411_v57 = vrot.slane %v1299_v56, 2  ;;  %v3869_v31 = vpop.permute.xlu1 %1154 }
 0x3d8   : > { %v1306_v33 = vrot.slane %v1298_v19, 6  ;;  %v1343_v22 = vrot.slane %v1298_v19, 7  ;;  %v1375_v28 = vrot.slane %v1298_v19, 1  ;;  %v1407_v3 = vrot.slane %v1298_v19, 2  ;;  %v3871_v11 = vpop.permute.xlu0 %1152 }
 0x3da   : > { %v1315_v36 = vsel %vm1314_vm8, %v1306_v33, %v1310_v15  ;;  %v1319_v20 = vsel %vm1314_vm8, %v1310_v15, %v1306_v33  ;;  %v1351_v39 = vsel %vm473_vm14, %v1343_v22, %v1347_v63  ;;  %v1387_v34 = vsel %vm510_vm15, %v1379_v30, %v1375_v28 }
 0x3db   : > { %v1327_v40 = vsel %vm217_vm7, %v1319_v20, 0.0  ;;  %v1336_v41 = vmax.f32 %v1299_v56, %v1315_v36  ;;  %v1420_v32 = vsel %vm1415_vm9, %v1411_v57, %v1407_v3  ;;  %v1231_v5 = vpop.permute.xlu1 %1230  ;;  %v1355_v54 = vsel %vm473_vm14, %v1347_v63, %v1343_v22 }
 0x3dc   : > { %v1335_v47 = vmax.f32 %v1298_v19, %v1327_v40  ;;  %v1229_v18 = vpop.permute.xlu0 %1228  ;;  %v1392_v45 = vsel %vm222_vm13, %v1387_v34, 0.0  ;;  %v1359_v42 = vsel %vm219_vm12, %v1355_v54, 0.0  ;;  %v1383_v16 = vsel %vm510_vm15, %v1375_v28, %v1379_v30 }
 0x3dd   : > { %v1368_v52 = vmax.f32 %v1336_v41, %v1351_v39  ;;  %v1416_v60 = vsel %vm1415_vm9, %v1407_v3, %v1411_v57  ;;  %v1429_v46 = vsel %vm224_vm4, %v1420_v32, 0.0  ;;  %v1251_v23 = vsel %vm227_vm11, %v1231_v5, 0.0 }
 0x3de   : > { %v1367_v7 = vmax.f32 %v1335_v47, %v1359_v42  ;;  %v1250_v26 = vsel %vm227_vm11, %v1229_v18, 0.0  ;;  %v1259_v29 = vmax.f32 %v1219_v17, %v1251_v23 }
 0x3df   : > { %v1400_v12 = vmax.f32 %v1368_v52, %v1392_v45  ;;  %v1195_v55 = vpop.permute.xlu1 %1194  ;;  %v1258_v25 = vmax.f32 %v1218_v14, %v1250_v26  ;;  %v1172_v52 = vsel %vm225_vm5, %v3871_v11, 0.0 }
 0x3e0   : > { %v1193_v8 = vpop.permute.xlu0 %1192  ;;  %v1399_v24 = vmax.f32 %v1367_v7, %v1383_v16  ;;  %v1213_v42 = vsel %vm226_vm10, %v1195_v55, 0.0 }
 0x3e1   : > { %v1437_v51 = vmax.f32 %v1400_v12, %v1429_v46  ;;  %v1212_v12 = vsel %vm226_vm10, %v1193_v8, 0.0 }
 0x3e2   : > { %v1436_v56 = vmax.f32 %v1399_v24, %v1416_v60 }
 0x3e3   : > { %v1273_v9 = vpop.permute.xlu1 %1272  ;;  %v1445_v33 = vmul.f32 %v1437_v51, %v3188_v58  ;;  %v1173_v58 = vsel %vm225_vm5, %v3869_v31, 0.0 }
 0x3e4   : > { %v1293_v27 = vsel %vm228_vm6, %v1273_v9, 0.0  ;;  %v1271_v19 = vpop.permute.xlu0 %1270  ;;  %v1444_v30 = vmul.f32 %v1436_v56, %v3192_v61  ;;  %v1181_v45 = vmax.f32 %v3404_v48, %v1173_v58  ;;  %v1180_v48 = vmax.f32 %v3407_v50, %v1172_v52 }
 0x3e5   : > { %v1301_v15 = vmax.f32 %v1259_v29, %v1293_v27  ;;  %v1292_v63 = vsel %vm228_vm6, %v1271_v19, 0.0 }
 0x3e6   : > { %v1300_v57 = vmax.f32 %v1258_v25, %v1292_v63  ;;  %2425 = vmatprep.mubr.msk.f32.mxu0 %vm229_vm0, %v1444_v30  ;;  %v1221_v26 = vmax.f32 %v1181_v45, %v1213_v42  ;;  %v1220_v14 = vmax.f32 %v1180_v48, %v1212_v12 }
 0x3e7   : > { %v1311_v22 = vrot.slane %v1301_v15, 6  ;;  %v1348_v28 = vrot.slane %v1301_v15, 7  ;;  %v1159_v3 = vpop.permute.xlu1 %1158  ;;  %2426 = vmatmul.mubr.msk.f32.vlgmr.msra.gmra.mrb[8].mxu0 %vm229_vm0, %v1445_v33  ;;  %v1380_v39 = vrot.slane %v1301_v15, 1  ;;  %v1412_v41 = vrot.slane %v1301_v15, 2 }
 0x3e8   : > { %v1307_v10 = vrot.slane %v1300_v57, 6  ;;  %v1344_v36 = vrot.slane %v1300_v57, 7  ;;  %v1157_v20 = vpop.permute.xlu0 %1156  ;;  %v1376_v34 = vrot.slane %v1300_v57, 1  ;;  %v1408_v5 = vrot.slane %v1300_v57, 2 }
 0x3e9   : > { %v1175_v9 = vsel %vm225_vm5, %v1159_v3, 0.0  ;;  %v1174_v19 = vsel %vm225_vm5, %v1157_v20, 0.0 }
 0x3ea   : > { %v1320_v40 = vsel %vm1314_vm8, %v1311_v22, %v1307_v10  ;;  %v1356_v61 = vsel %vm473_vm14, %v1348_v28, %v1344_v36  ;;  %v1316_v53 = vsel %vm1314_vm8, %v1307_v10, %v1311_v22  ;;  %v1388_v31 = vsel %vm510_vm15, %v1380_v39, %v1376_v34 }
 0x3eb   : > { %v1329_v32 = vsel %vm217_vm7, %v1320_v40, 0.0  ;;  %v1235_v47 = vpop.permute.xlu1 %1234  ;;  %v1361_v54 = vsel %vm219_vm12, %v1356_v61, 0.0  ;;  %v1338_v38 = vmax.f32 %v1301_v15, %v1316_v53  ;;  %v1352_v44 = vsel %vm473_vm14, %v1344_v36, %v1348_v28 }
 0x3ec   : > { %v1337_v18 = vmax.f32 %v1300_v57, %v1329_v32  ;;  %v1233_v37 = vpop.permute.xlu0 %1232  ;;  %v1384_v7 = vsel %vm510_vm15, %v1376_v34, %v1380_v39  ;;  %v1421_v35 = vsel %vm1415_vm9, %v1412_v41, %v1408_v5  ;;  %v1253_v55 = vsel %vm227_vm11, %v1235_v47, 0.0 }
 0x3ed   : > { %v1370_v60 = vmax.f32 %v1338_v38, %v1352_v44  ;;  %v1394_v17 = vsel %vm222_vm13, %v1388_v31, 0.0  ;;  %v1252_v8 = vsel %vm227_vm11, %v1233_v37, 0.0  ;;  %v1417_v24 = vsel %vm1415_vm9, %v1408_v5, %v1412_v41 }
 0x3ee   : > { %v1369_v16 = vmax.f32 %v1337_v18, %v1361_v54  ;;  %v1431_v50 = vsel %vm224_vm4, %v1421_v35, 0.0  ;;  %v1261_v56 = vmax.f32 %v1221_v26, %v1253_v55  ;;  %v1260_v15 = vmax.f32 %v1220_v14, %v1252_v8 }
 0x3ef   : > { %v1199_v11 = vpop.permute.xlu1 %1198  ;;  %v1402_v51 = vmax.f32 %v1370_v60, %v1394_v17  ;;  %v1183_v20 = vmax.f32 %v3430_v62, %v1175_v9  ;;  %v1182_v39 = vmax.f32 %v3433_v2, %v1174_v19 }
 0x3f0   : > { %v1197_v46 = vpop.permute.xlu0 %1196  ;;  %v1401_v23 = vmax.f32 %v1369_v16, %v1384_v7  ;;  %v1215_v3 = vsel %vm226_vm10, %v1199_v11, 0.0 }
 0x3f1   : > { %v1439_v27 = vmax.f32 %v1402_v51, %v1431_v50  ;;  %v1214_v10 = vsel %vm226_vm10, %v1197_v46, 0.0  ;;  %v1223_v41 = vmax.f32 %v1183_v20, %v1215_v3 }
 0x3f2   : > { %v1438_v29 = vmax.f32 %v1401_v23, %v1417_v24  ;;  %v1222_v32 = vmax.f32 %v1182_v39, %v1214_v10 }
 0x3f3   : > { %v1277_v25 = vpop.permute.xlu1 %1276  ;;  %v1447_v28 = vmul.f32 %v1439_v27, %v3226_v43 }
 0x3f4   : > { %v1295_v63 = vsel %vm228_vm6, %v1277_v25, 0.0  ;;  %v1275_v30 = vpop.permute.xlu0 %1274  ;;  %v1446_v57 = vmul.f32 %v1438_v29, %v3229_v49 }
 0x3f5   : > { %v1303_v33 = vmax.f32 %v1261_v56, %v1295_v63  ;;  %v1294_v22 = vsel %vm228_vm6, %v1275_v30, 0.0 }
 0x3f6   : > { %v1302_v36 = vmax.f32 %v1260_v15, %v1294_v22  ;;  %2428 = vmatprep.mubr.msk.f32.mxu0 %vm229_vm0, %v1446_v57 }
 0x3f7   : > { %v1312_v49 = vrot.slane %v1303_v33, 6  ;;  %v1349_v34 = vrot.slane %v1303_v33, 7  ;;  %2429 = vmatmul.mubr.msk.f32.gmra.mrb[10].mxu0 %vm229_vm0, %v1447_v28  ;;  %v1239_v40 = vpop.permute.xlu1 %1238  ;;  %v1381_v18 = vrot.slane %v1303_v33, 1  ;;  %v1413_v53 = vrot.slane %v1303_v33, 2 }
 0x3f8   : > { %v1308_v61 = vrot.slane %v1302_v36, 6  ;;  %v1345_v43 = vrot.slane %v1302_v36, 7  ;;  %v1237_v58 = vpop.permute.xlu0 %1236  ;;  %v1255_v5 = vsel %vm227_vm11, %v1239_v40, 0.0  ;;  %v1377_v2 = vrot.slane %v1302_v36, 1 }
 0x3f9   : > { %v1254_v47 = vsel %vm227_vm11, %v1237_v58, 0.0  ;;  %v1409_v54 = vrot.slane %v1302_v36, 2  ;;  %v1263_v38 = vmax.f32 %v1223_v41, %v1255_v5  ;;  %vm2176_vm11 = vcmask 15360  }
 0x3fa   : > { %v1321_v62 = vsel %vm1314_vm8, %v1312_v49, %v1308_v61  ;;  %v1357_v37 = vsel %vm473_vm14, %v1349_v34, %v1345_v43  ;;  %v1262_v42 = vmax.f32 %v1222_v32, %v1254_v47  ;;  %v1317_v12 = vsel %vm1314_vm8, %v1308_v61, %v1312_v49 }
 0x3fb   : > { %v1331_v52 = vsel %vm217_vm7, %v1321_v62, 0.0  ;;  %v1281_v31 = vpop.permute.xlu1 %1280  ;;  %v1363_v60 = vsel %vm219_vm12, %v1357_v37, 0.0  ;;  %v1340_v35 = vmax.f32 %v1303_v33, %v1317_v12  ;;  %v1385_v46 = vsel %vm510_vm15, %v1377_v2, %v1381_v18 }
 0x3fc   : > { %v1339_v45 = vmax.f32 %v1302_v36, %v1331_v52  ;;  %v1297_v16 = vsel %vm228_vm6, %v1281_v31, 0.0  ;;  %v1279_v44 = vpop.permute.xlu0 %1278  ;;  %v1418_v26 = vsel %vm1415_vm9, %v1409_v54, %v1413_v53  ;;  %v1389_v8 = vsel %vm510_vm15, %v1381_v18, %v1377_v2 }
 0x3fd   : > { %v1305_v11 = vmax.f32 %v1263_v38, %v1297_v16  ;;  %v1296_v7 = vsel %vm228_vm6, %v1279_v44, 0.0  ;;  %v1353_v51 = vsel %vm473_vm14, %v1345_v43, %v1349_v34  ;;  %v1422_v14 = vsel %vm1415_vm9, %v1413_v53, %v1409_v54 }
 0x3fe   : > { %v1304_v48 = vmax.f32 %v1262_v42, %v1296_v7  ;;  %v1371_v55 = vmax.f32 %v1339_v45, %v1363_v60  ;;  %v1372_v56 = vmax.f32 %v1340_v35, %v1353_v51  ;;  %v1396_v19 = vsel %vm222_vm13, %v1389_v8, 0.0 }
 0x3ff   : > { %v1313_v23 = vrot.slane %v1305_v11, 6  ;;  %v1350_v17 = vrot.slane %v1305_v11, 7  ;;  %v1382_v29 = vrot.slane %v1305_v11, 1  ;;  %v1414_v25 = vrot.slane %v1305_v11, 2 }
 0x400   : > { %v1309_v24 = vrot.slane %v1304_v48, 6  ;;  %v1346_v1 = vrot.slane %v1304_v48, 7  ;;  %v1378_v50 = vrot.slane %v1304_v48, 1  ;;  %v1403_v9 = vmax.f32 %v1371_v55, %v1385_v46 }
 0x401   : > { %v1410_v30 = vrot.slane %v1304_v48, 2  ;;  %v1404_v33 = vmax.f32 %v1372_v56, %v1396_v19  ;;  %v1433_v28 = vsel %vm224_vm4, %v1422_v14, 0.0 }
 0x402   : > { %v1322_v27 = vsel %vm1314_vm8, %v1313_v23, %v1309_v24  ;;  %v1358_v15 = vsel %vm473_vm14, %v1350_v17, %v1346_v1  ;;  %v1440_v57 = vmax.f32 %v1403_v9, %v1418_v26  ;;  %v1318_v10 = vsel %vm1314_vm8, %v1309_v24, %v1313_v23 }
 0x403   : > { %v1333_v63 = vsel %vm217_vm7, %v1322_v27, 0.0  ;;  %v1365_v3 = vsel %vm219_vm12, %v1358_v15, 0.0  ;;  %v1441_v20 = vmax.f32 %v1404_v33, %v1433_v28  ;;  %v1342_v39 = vmax.f32 %v1305_v11, %v1318_v10 }
 0x404   : > { %v1341_v22 = vmax.f32 %v1304_v48, %v1333_v63  ;;  %v1448_v36 = vmul.f32 %v1440_v57, %v3262_v6  ;;  %v1390_v49 = vsel %vm510_vm15, %v1382_v29, %v1378_v50  ;;  %v1354_v40 = vsel %vm473_vm14, %v1346_v1, %v1350_v17 }
 0x405   : > { %v1449_v61 = vmul.f32 %v1441_v20, %v3259_v13  ;;  %v1386_v43 = vsel %vm510_vm15, %v1378_v50, %v1382_v29  ;;  %v1374_v58 = vmax.f32 %v1342_v39, %v1354_v40  ;;  %v1423_v6 = vsel %vm1415_vm9, %v1414_v25, %v1410_v30 }
 0x406   : > { %v1373_v34 = vmax.f32 %v1341_v22, %v1365_v3  ;;  %2431 = vmatprep.mubr.msk.f32.mxu0 %vm229_vm0, %v1448_v36  ;;  %v1398_v32 = vsel %vm222_vm13, %v1390_v49, 0.0  ;;  %v1419_v5 = vsel %vm1415_vm9, %v1410_v30, %v1414_v25  ;;  %v1435_v13 = vsel %vm224_vm4, %v1423_v6, 0.0 }
 0x407   : > { %2432 = vmatmul.mubr.msk.f32.gmra.mrb[12].mxu0 %vm229_vm0, %v1449_v61  ;;  %v1406_v47 = vmax.f32 %v1374_v58, %v1398_v32  ;;  %vm2178_vm12 = vcmask 23552   ;;  %vm2180_vm13 = vcmask 31744  }
 0x408   : > { %v1405_v41 = vmax.f32 %v1373_v34, %v1386_v43 }
 0x409   : > { %v1443_v62 = vmax.f32 %v1406_v47, %v1435_v13 }
 0x40a   : > { %v1442_v18 = vmax.f32 %v1405_v41, %v1419_v5 }
 0x40b   : > { %v1451_v37 = vmul.f32 %v1443_v62, %v3295_v0 }
 0x40c   : > { %v1450_v2 = vmul.f32 %v1442_v18, %v3300_v59 }
 0x40e   : > { %2434 = vmatprep.mubr.msk.f32.mxu0 %vm229_vm0, %v1450_v2 }
 0x40f   : > { %2435 = vmatmul.mubr.msk.f32.gmra.mrb[14].mxu0 %vm229_vm0, %v1451_v37  ;;  %vm4128_vm0 = vcmask 1043459  }
 0x410   : > { %vm4129_vm10 = vmmov %vm4128_vm0 }
 0x47e   : > { %v2443_v53 = vpop.f32.mrb[8].mxu1 }
 0x47f   : > { %v2099_v52 = vsel %vm676_vm1, %v2443_v53, 0.0  ;;  %v2059_v54 = vpop.f32.mrb[9].mxu1 }
 0x480   : > { %v2098_v4 = vsel %vm676_vm1, %v2059_v54, 0.0 }
 0x481   : > { %v2100_v38 = vadd.f32 %v2099_v52, %v2098_v4 }
 0x483   : > { %v2101_v31 = vrot.slane %v2100_v38, 4 }
 0x485   : > { %v2102_v45 = vadd.f32 %v2101_v31, %v2100_v38 }
 0x487   : > { %v2103_v0 = vrot.slane %v2102_v45, 2 }
 0x489   : > { %v2104_v11 = vadd.f32 %v2103_v0, %v2102_v45 }
 0x48b   : > { %v2105_v35 = vrot.slane %v2104_v11, 1 }
 0x48d   : > { %v2106_v46 = vadd.f32 %v2105_v35, %v2104_v11 }
 0x48e   : > { %v2446_v21 = vpop.f32.mrb[10].mxu1 }
 0x48f   : > { %v2108_v42 = vsel %vm676_vm1, %v2446_v21, 0.0  ;;  %v2069_v16 = vpop.f32.mrb[11].mxu1 }
 0x490   : > { %v2107_v59 = vsel %vm676_vm1, %v2069_v16, 0.0 }
 0x491   : > { %v2109_v44 = vadd.f32 %v2108_v42, %v2107_v59 }
 0x493   : > { %v2110_v12 = vrot.slane %v2109_v44, 4 }
 0x495   : > { %v2111_v7 = vadd.f32 %v2110_v12, %v2109_v44 }
 0x497   : > { %v2112_v60 = vrot.slane %v2111_v7, 2 }
 0x499   : > { %v2113_v48 = vadd.f32 %v2112_v60, %v2111_v7 }
 0x49b   : > { %v2114_v55 = vrot.slane %v2113_v48, 1 }
 0x49d   : > { %v2115_v23 = vadd.f32 %v2114_v55, %v2113_v48 }
 0x49e   : > { %v2449_v26 = vpop.f32.mrb[12].mxu1 }
 0x49f   : > { %v2159_v17 = vsel %vm2138_vm2, %v2115_v23, %v2106_v46  ;;  %v2117_v8 = vsel %vm676_vm1, %v2449_v26, 0.0  ;;  %v2079_v24 = vpop.f32.mrb[13].mxu1 }
 0x4a0   : > { %v2116_v1 = vsel %vm676_vm1, %v2079_v24, 0.0 }
 0x4a1   : > { %v2118_v51 = vadd.f32 %v2117_v8, %v2116_v1 }
 0x4a3   : > { %v2119_v14 = vrot.slane %v2118_v51, 4 }
 0x4a5   : > { %v2120_v29 = vadd.f32 %v2119_v14, %v2118_v51 }
 0x4a6   : > { %v2452_v50 = vpop.f32.mrb[14].mxu1 }
 0x4a7   : > { %v2121_v9 = vrot.slane %v2120_v29, 2  ;;  %v2126_v56 = vsel %vm676_vm1, %v2452_v50, 0.0  ;;  %v2089_v25 = vpop.f32.mrb[15].mxu1  ;;  %v2153_v50 = vpop.permute.xlu0 %2152 }
 0x4a8   : > { %v2125_v27 = vsel %vm676_vm1, %v2089_v25, 0.0 }
 0x4a9   : > { %v2122_v19 = vadd.f32 %v2121_v9, %v2120_v29  ;;  %v2127_v15 = vadd.f32 %v2126_v56, %v2125_v27 }
 0x4ab   : > { %v2123_v63 = vrot.slane %v2122_v19, 1  ;;  %v2128_v30 = vrot.slane %v2127_v15, 4  ;;  %v2173_v25 = vpop.permute.xlu0 %2172 }
 0x4ad   : > { %v2124_v57 = vadd.f32 %v2123_v63, %v2122_v19  ;;  %v2129_v33 = vadd.f32 %v2128_v30, %v2127_v15 }
 0x4af   : > { %v2130_v22 = vrot.slane %v2129_v33, 2  ;;  %v2160_v28 = vsel %vm2140_vm3, %v2124_v57, %v2159_v17 }
 0x4b1   : > { %v2131_v3 = vadd.f32 %v2130_v22, %v2129_v33 }
 0x4b3   : > { %v2132_v10 = vrot.slane %v2131_v3, 1 }
 0x4b5   : > { %v2133_v36 = vadd.f32 %v2132_v10, %v2131_v3 }
 0x4b7   : > { %v2161_v20 = vsel %vm4128_vm0, %v2133_v36, %v2160_v28 }
 0x4b8   : > { %2162 = vrot.lane.b32.xlu1 %v2161_v20, %s2769_s29 }
 0x4ba   : > { %v2427_v39 = vpop.f32.mrb[8].mxu0 }
 0x4bb   : > { %v1582_v49 = vsel %vm676_vm1, %v2427_v39, 0.0  ;;  %v1542_v34 = vpop.f32.mrb[9].mxu0 }
 0x4bc   : > { %v1581_v40 = vsel %vm676_vm1, %v1542_v34, 0.0 }
 0x4bd   : > { %v1583_v61 = vadd.f32 %v1582_v49, %v1581_v40 }
 0x4bf   : > { %v1584_v43 = vrot.slane %v1583_v61, 4 }
 0x4c1   : > { %v1585_v58 = vadd.f32 %v1584_v43, %v1583_v61 }
 0x4c3   : > { %v1586_v47 = vrot.slane %v1585_v58, 2 }
 0x4c5   : > { %v1587_v62 = vadd.f32 %v1586_v47, %v1585_v58 }
 0x4c7   : > { %v1588_v53 = vrot.slane %v1587_v62, 1 }
 0x4c9   : > { %v1589_v4 = vadd.f32 %v1588_v53, %v1587_v62 }
 0x4ca   : > { %v2430_v6 = vpop.f32.mrb[10].mxu0 }
 0x4cb   : > { %v1591_v41 = vsel %vm676_vm1, %v2430_v6, 0.0  ;;  %v1552_v32 = vpop.f32.mrb[11].mxu0 }
 0x4cc   : > { %v1590_v5 = vsel %vm676_vm1, %v1552_v32, 0.0 }
 0x4cd   : > { %v1592_v18 = vadd.f32 %v1591_v41, %v1590_v5 }
 0x4cf   : > { %v1593_v13 = vrot.slane %v1592_v18, 4 }
 0x4d1   : > { %v1594_v2 = vadd.f32 %v1593_v13, %v1592_v18 }
 0x4d3   : > { %v1595_v37 = vrot.slane %v1594_v2, 2 }
 0x4d5   : > { %v1596_v52 = vadd.f32 %v1595_v37, %v1594_v2 }
 0x4d7   : > { %v1597_v54 = vrot.slane %v1596_v52, 1 }
 0x4d9   : > { %v1598_v38 = vadd.f32 %v1597_v54, %v1596_v52 }
 0x4da   : > { %v2433_v45 = vpop.f32.mrb[12].mxu0 }
 0x4db   : > { %v2139_v31 = vsel %vm2138_vm2, %v1598_v38, %v1589_v4  ;;  %v1600_v21 = vsel %vm676_vm1, %v2433_v45, 0.0  ;;  %v1562_v42 = vpop.f32.mrb[13].mxu0 }
 0x4dc   : > { %v1599_v16 = vsel %vm676_vm1, %v1562_v42, 0.0 }
 0x4dd   : > { %v1601_v59 = vadd.f32 %v1600_v21, %v1599_v16 }
 0x4df   : > { %v1602_v0 = vrot.slane %v1601_v59, 4 }
 0x4e1   : > { %v1603_v12 = vadd.f32 %v1602_v0, %v1601_v59 }
 0x4e2   : > { %v2436_v44 = vpop.f32.mrb[14].mxu0 }
 0x4e3   : > { %v1609_v11 = vsel %vm676_vm1, %v2436_v44, 0.0  ;;  %v1572_v7 = vpop.f32.mrb[15].mxu0  ;;  %v1604_v35 = vrot.slane %v1603_v12, 2 }
 0x4e4   : > { %v1608_v60 = vsel %vm676_vm1, %v1572_v7, 0.0 }
 0x4e5   : > { %v1610_v48 = vadd.f32 %v1609_v11, %v1608_v60  ;;  %v1605_v55 = vadd.f32 %v1604_v35, %v1603_v12 }
 0x4e7   : > { %v1611_v46 = vrot.slane %v1610_v48, 4  ;;  %v1606_v23 = vrot.slane %v1605_v55, 1 }
 0x4e9   : > { %v1612_v17 = vadd.f32 %v1611_v46, %v1610_v48  ;;  %v1607_v26 = vadd.f32 %v1606_v23, %v1605_v55 }
 0x4eb   : > { %v1613_v8 = vrot.slane %v1612_v17, 2  ;;  %v2141_v1 = vsel %vm2140_vm3, %v1607_v26, %v2139_v31 }
 0x4ed   : > { %v1614_v24 = vadd.f32 %v1613_v8, %v1612_v17 }
 0x4ef   : > { %v1615_v51 = vrot.slane %v1614_v24, 1 }
 0x4f1   : > { %v1616_v14 = vadd.f32 %v1615_v51, %v1614_v24 }
 0x4f3   : > { %v2143_v29 = vsel %vm4129_vm10, %v1616_v14, %v2141_v1 }
 0x4f4   : > { %v2175_v9 = vsel %vm676_vm1, %v2143_v29, %v2153_v50 }
 0x52a   : > { %v2163_v56 = vpop.permute.xlu1 %2162 }
 0x52b   : > { %v2177_v27 = vsel %vm2176_vm11, %v2175_v9, %v2163_v56 }
 0x52c   : > { %v2179_v19 = vsel %vm2178_vm12, %v2177_v27, %v2173_v25 }
 0x52d   : > { %v2181_v15 = vsel %vm2180_vm13, %v2179_v19, 0.0 }
 0x52e   : > { %2182 = vst [vmem:[%s201_s14] sm:$0xf] %v2181_v15 }
 0x52f   : > { %2697 = shalt.err (!%p2694_p11)
}
 0x530   : > { %s2698_s30 = scalar_lea.hbm %s4071_s3, 64  ;;  %s2702_s17 = scalar_lea.hbm %s4117_s2, 128 }
 0x531   : > { %p2699_p3 = scmp.ne.s32.totalorder %s4071_s3, %s2698_s30  ;;  %p2703_p2 = scmp.lt.u32.totalorder %s4071_s3, %s4117_s2 }
 0x532   : > { %p2704_p4 = scmp.lt.u32.totalorder %s2702_s17, %s2698_s30  ;;  %p2706_p13 = scmp.lt.u32.totalorder %s2698_s30, %s4071_s3 }
 0x533   : > { %p2700_p8 = pnand %p2699_p3, %p4130_p1 }
 0x534   : > { %p2705_p6 = por %p2704_p4, %p2703_p2 }
 0x535   : > { %p2701_p0 = pneg %p2700_p8 }
 0x536   : > { %p2707_p12 = por %p2706_p13, %p2705_p6 }
 0x538   : > { %p2708_p10 = pnand %p2707_p12, %p2701_p0 }
 0x53a   : > { %2711 = shalt.err (!%p2708_p10)
}
 0x53b   : > { %2465 = dma.vmem_to_hbm [thread:$0]  (%p4130_p1), %s4073_s16, 64, %s4071_s3, %s2184_s13  }
 0x53c PF: > { %s2209_s25 = sand.u32 1, %s2742_s9   ;;  %p4131_p5 = scmp.ne.s32.totalorder %s4124_s22, 0 }
 0x53d   : > { %p4132_p7 = scmp.ge.s32.totalorder %s2754_s12, 2  ;;  %s2210_s29 = scalar_lea.sflag [#allocation4], %s2209_s25 }
 0x53f   : > { %p2475_p9 = pnand %p4132_p7, %p4131_p5 }
 0x541   : > { %2737 = dma.done.wait (!%p2475_p9), %s2210_s29, 64  }
 0x542   : > { %2739 = vsyncadd (!%p2475_p9), %s2210_s29, 4294967232  ;;  %p18_p11 = scmp.ge.s32.totalorder %s2811_s15, 4   ;;  %s4133_s9 = smov %s2746_s10 }
 0x543   : > { %s4134_s10 = smov %s2750_s11  ;;  %s4135_s11 = smov %s2823_s18 }
 0x544   : > { %s4136_s12 = smov %s2811_s15  ;;  %20 = sbr.rel (!%p18_p11) target bundleno = 7 (0x7), region = 86 }
 0x54b   :  { %2215 = vsyncpa [#allocation3], 1 }
 0x54c   :  { %2217 = vsyncpa [#allocation3 + $0x1], 1 }
 0x54d   :  { %2218 = vsyncpa [#allocation6], 1 }
 0x54e   :  { %2220 = vsyncpa [#allocation6 + $0x1], 1 }
 0x54f   :  { %2221 = vsyncpa [#allocation4], 1 }
 0x550   :  { %2223 = vsyncpa [#allocation4 + $0x1], 1 }

</bundles_post_ra>
